<compile_context>
chip_gen: v5e
topology: v5e:2x2
jax: 0.10.0
libtpu: 0.0.40
codegen_flags: <defaults>
</compile_context>

<pallas_src>
import functools
import math

import jax
import jax.numpy as jnp
from jax.experimental import pallas as pl
from jax.experimental.pallas import tpu as pltpu

_MiB = 1024 * 1024


# ---------------------------------------------------------------------------
# VMEM-aware tile sizing
# ---------------------------------------------------------------------------
def _tpu_vmem_bytes() -> int:
    """Per-TensorCore VMEM capacity; conservative 64 MiB (v7x) fallback."""
    try:
        cap = getattr(pltpu.get_tpu_info(), "vmem_capacity_bytes", None)
        if cap:
            return int(cap)
    except Exception:
        pass
    return 64 * _MiB


def _vmem_limit_bytes() -> int:
    # Raise the scoped-VMEM limit above the 16/32 MiB default, keep headroom.
    return int(_tpu_vmem_bytes() * 3 // 4)


def _round_up(v: int, m: int) -> int:
    return -(-v // m) * m


def _pick_rows_tile(rows: int, per_row_f32: int, fixed_f32: int, max_tile: int = 1024) -> int:
    """Largest row tile (multiple of 8) so double-buffered row streams plus the
    single-buffered resident weights fit in ~half of this chip's VMEM."""
    budget = _tpu_vmem_bytes() // 2
    per_row_bytes = per_row_f32 * 4 * 2          # row-streamed blocks, double-buffered
    fixed_bytes = fixed_f32 * 4                  # resident weights, single-buffered
    avail = budget - fixed_bytes
    if avail < per_row_bytes * 8:
        # TODO(synk): K/N-tile the resident weights (reduction grid axis + f32
        # accumulator scratch) instead of refusing; needed for very large
        # d_model/d_ff on v7x's 64 MiB VMEM.
        raise ValueError(
            f"resident weights need {fixed_bytes / _MiB:.1f} MiB, leaving no room for an "
            f"8-row tile inside the {budget / _MiB:.1f} MiB VMEM budget; weight tiling required")
    tile = max(8, min(max_tile, avail // per_row_bytes))
    tile = (tile // 8) * 8
    # Keep >= 2 grid steps so the "parallel" axis can shard across both
    # TensorCores on v7x (harmless on single-TC v5e / v6e).
    if rows >= 16:
        tile = min(tile, _round_up((rows + 1) // 2, 8))
    tile = min(tile, _round_up(rows, 8))
    return max(int(tile), 8)


def _compiler_params(n_grid_axes: int = 1):
    return pltpu.CompilerParams(
        dimension_semantics=("parallel",) * n_grid_axes,
        vmem_limit_bytes=_vmem_limit_bytes())


def _const_spec(shape):
    """Grid-invariant operand (weights / biases): constant index map,
    single-buffered so it does not burn VMEM on pointless double buffering."""
    index_map = lambda *_: (0,) * len(shape)
    try:
        return pl.BlockSpec(shape, index_map, pipeline_mode=pl.Buffered(1))
    except TypeError:
        return pl.BlockSpec(shape, index_map)


def _ln_gb_spec():
    # LayerNorm gamma/beta: two f32 scalars streamed through SMEM.
    return pl.BlockSpec((2,), lambda *_: (0,), memory_space=pltpu.MemorySpace.SMEM)


# ---------------------------------------------------------------------------
# Kernel bodies
# ---------------------------------------------------------------------------
def _layernorm(x, gamma, beta, eps):
    # Matches the PyTorch module exactly: unbiased std (ddof=1, torch.Tensor.std),
    # eps added to sigma**2 inside the sqrt, scalar gamma/beta.  Statistics are
    # kept in f32; the output is cast back to x.dtype so the consuming matmul
    # stays in the operand's native (e.g. bf16) dtype.
    d = x.shape[-1]
    xf = x.astype(jnp.float32)
    mu = jnp.mean(xf, axis=-1, keepdims=True)
    diff = xf - mu
    var = jnp.sum(diff * diff, axis=-1, keepdims=True) * (1.0 / (d - 1))
    norm = diff * jax.lax.rsqrt(var + eps)
    return (gamma * norm + beta).astype(x.dtype)


def _proj_kernel(*refs, n_out, apply_ln, eps):
    """[optional LayerNorm] + n_out independent Linear layers sharing one x read."""
    idx = 0
    gamma = beta = None
    if apply_ln:
        gb_ref = refs[0]
        gamma, beta = gb_ref[0], gb_ref[1]
        idx = 1
    x_ref = refs[idx]
    wb_refs = refs[idx + 1: idx + 1 + 2 * n_out]
    out_refs = refs[idx + 1 + 2 * n_out:]
    x = x_ref[...]
    if apply_ln:
        x = _layernorm(x, gamma, beta, eps)
    for j in range(n_out):
        w = wb_refs[2 * j][...]
        b = wb_refs[2 * j + 1][...]
        y = jnp.dot(x, w, preferred_element_type=jnp.float32) + b.astype(jnp.float32)
        out_refs[j][...] = y.astype(out_refs[j].dtype)


def _attn_block_kernel(q_ref, k_ref, v_ref, mask_ref, wo_ref, bo_ref, res_ref,
                       o_ref, *, h, dk, scale):
    """One batch: all h heads of softmax(mask(q k^T * scale)) @ v, folded into
    W_o (cat(heads) @ Wo == sum_i head_i @ Wo[i*dk:(i+1)*dk]) plus bias and the
    residual, written as one lane-dense (Sq, d_model) block."""
    q = q_ref[...]                                     # (Sq, d_att)
    k = k_ref[...]                                     # (Sk, d_att)
    v = v_ref[...]                                     # (Sk, d_att)
    masked = mask_ref[...] == 0                        # (Sq, Sk); mask read once per batch
    acc = res_ref[...].astype(jnp.float32) + bo_ref[...].astype(jnp.float32)
    for i in range(h):                                 # static unroll over heads
        qi = q[:, i * dk:(i + 1) * dk]
        ki = k[:, i * dk:(i + 1) * dk]
        vi = v[:, i * dk:(i + 1) * dk]
        s = jax.lax.dot_general(qi, ki, (((1,), (1,)), ((), ())),
                                preferred_element_type=jnp.float32) * scale
        # masked_fill(mask == 0, -inf); -1e30 is equivalent post-softmax whenever
        # every query row has at least one un-masked key.
        s = jnp.where(masked, jnp.float32(-1e30), s)
        m = jnp.max(s, axis=-1, keepdims=True)
        p = jnp.exp(s - m)
        p = p * pl.reciprocal(jnp.sum(p, axis=-1, keepdims=True), approx=True)
        head = jnp.dot(p.astype(vi.dtype), vi, preferred_element_type=jnp.float32)
        acc += jnp.dot(head.astype(wo_ref.dtype), wo_ref[i * dk:(i + 1) * dk, :],
                       preferred_element_type=jnp.float32)
    # TODO(synk): attention-score dropout not implemented (eval-mode identity);
    # the per-head attention_scores side-buffer is not materialized to HBM.
    o_ref[...] = acc.astype(o_ref.dtype)


def _ln_ffn_residual_kernel(gb_ref, x_ref, w1_ref, b1_ref, w2_ref, b2_ref, o_ref, *, eps):
    """o = x + Linear2(relu(Linear1(LayerNorm(x))))  — whole FFN sublayer fused."""
    x = x_ref[...]
    n = _layernorm(x, gb_ref[0], gb_ref[1], eps)
    hdn = jnp.dot(n, w1_ref[...], preferred_element_type=jnp.float32) \
        + b1_ref[...].astype(jnp.float32)
    hdn = jnp.maximum(hdn, 0.0).astype(x.dtype)        # keep 2nd GEMM in native dtype
    y = jnp.dot(hdn, w2_ref[...], preferred_element_type=jnp.float32) \
        + b2_ref[...].astype(jnp.float32)
    o_ref[...] = (x.astype(jnp.float32) + y).astype(o_ref.dtype)


# ---------------------------------------------------------------------------
# Wrappers (pallas_call plumbing)
# ---------------------------------------------------------------------------
def fused_projections(x2, weights, biases, *, ln_gb=None, eps=1e-6):
    """x2: [rows, d_in].  Returns (optionally LayerNormed) x2 @ W_j + b_j for each
    j, computing the LayerNorm once per row tile and reusing it for every matmul."""
    rows, d_in = x2.shape
    n_out = len(weights)
    d_outs = [int(w.shape[1]) for w in weights]
    per_row = d_in + sum(d_outs)
    fixed = sum(d_in * d + d for d in d_outs)
    tile = _pick_rows_tile(rows, per_row, fixed)
    grid = (pl.cdiv(rows, tile),)
    apply_ln = ln_gb is not None

    in_specs, args = [], []
    if apply_ln:
        in_specs.append(_ln_gb_spec())
        args.append(ln_gb)
    in_specs.append(pl.BlockSpec((tile, d_in), lambda i: (i, 0)))
    args.append(x2)
    for w, b in zip(weights, biases):
        d_o = int(w.shape[1])
        in_specs.append(_const_spec((d_in, d_o)))
        in_specs.append(_const_spec((1, d_o)))
        args.extend([w, b.reshape(1, d_o)])

    out_specs = tuple(pl.BlockSpec((tile, d), lambda i: (i, 0)) for d in d_outs)
    out_shape = tuple(jax.ShapeDtypeStruct((rows, d), x2.dtype) for d in d_outs)

    kernel = functools.partial(_proj_kernel, n_out=n_out, apply_ln=apply_ln, eps=eps)
    return pl.pallas_call(
        kernel,
        out_shape=out_shape if n_out > 1 else out_shape[0],
        grid_spec=pltpu.PrefetchScalarGridSpec(
            num_scalar_prefetch=0, grid=grid,
            in_specs=in_specs,
            out_specs=out_specs if n_out > 1 else out_specs[0]),
        compiler_params=_compiler_params(1),
    )(*args)


def attention_block(q, k, v, mask, w_o, b_o, residual, *, h):
    """q: [B,Sq,d_att], k/v: [B,Sk,d_att], mask: [B,Sq,Sk] (0 = masked),
    residual: [B,Sq,d_model].  Returns residual + cat_heads(attn(q,k,v)) @ W_o + b_o.
    No head split/merge transposes: heads are sliced in VMEM inside the kernel."""
    B, Sq, d_att = q.shape
    Sk = k.shape[1]
    d_model = residual.shape[-1]
    assert d_att % h == 0, "d_att must be divisible by the number of heads"
    dk = d_att // h
    # TODO(synk): for long sequences tile the KV axis (flash-attention style)
    # instead of materializing the full Sq x Sk score block per head.
    kernel = functools.partial(_attn_block_kernel, h=h, dk=dk, scale=1.0 / math.sqrt(dk))
    return pl.pallas_call(
        kernel,
        out_shape=jax.ShapeDtypeStruct((B, Sq, d_model), residual.dtype),
        grid_spec=pltpu.PrefetchScalarGridSpec(
            num_scalar_prefetch=0, grid=(B,),
            in_specs=[
                pl.BlockSpec((None, Sq, d_att), lambda b: (b, 0, 0)),
                pl.BlockSpec((None, Sk, d_att), lambda b: (b, 0, 0)),
                pl.BlockSpec((None, Sk, d_att), lambda b: (b, 0, 0)),
                pl.BlockSpec((None, Sq, Sk), lambda b: (b, 0, 0)),
                _const_spec((d_att, d_model)),
                _const_spec((1, d_model)),
                pl.BlockSpec((None, Sq, d_model), lambda b: (b, 0, 0)),
            ],
            out_specs=pl.BlockSpec((None, Sq, d_model), lambda b: (b, 0, 0))),
        compiler_params=_compiler_params(1),
    )(q, k, v, mask, w_o, b_o.reshape(1, d_model), residual)


def ln_ffn_residual(x2, w1, b1, w2, b2, *, ln_gb, eps=1e-6):
    rows, d_model = x2.shape
    d_ff = int(w1.shape[1])
    per_row = 2 * d_model + 2 * d_ff                    # x/out tiles + f32 hidden + relu copy
    fixed = 2 * d_model * d_ff + d_ff + d_model
    # Cap the tile so the live (tile, d_ff) f32 hidden stays <= ~4 MiB (v7x headroom).
    max_tile = min(1024, max(64, (4 * _MiB) // (4 * max(d_ff, 1))))
    tile = _pick_rows_tile(rows, per_row, fixed, max_tile=max_tile)
    grid = (pl.cdiv(rows, tile),)
    kernel = functools.partial(_ln_ffn_residual_kernel, eps=eps)
    return pl.pallas_call(
        kernel,
        out_shape=jax.ShapeDtypeStruct((rows, d_model), x2.dtype),
        grid_spec=pltpu.PrefetchScalarGridSpec(
            num_scalar_prefetch=0, grid=grid,
            in_specs=[
                _ln_gb_spec(),
                pl.BlockSpec((tile, d_model), lambda i: (i, 0)),
                _const_spec((d_model, d_ff)),
                _const_spec((1, d_ff)),
                _const_spec((d_ff, d_model)),
                _const_spec((1, d_model)),
            ],
            out_specs=pl.BlockSpec((tile, d_model), lambda i: (i, 0))),
        compiler_params=_compiler_params(1),
    )(ln_gb, x2, w1, b1.reshape(1, d_ff), w2, b2.reshape(1, d_model))


# ---------------------------------------------------------------------------
# DecoderBlock forward (eval mode: dropout = identity)
# ---------------------------------------------------------------------------
def decoder_block_forward(params, x, encoder_out, src_mask, target_mask, *, h, eps=1e-6):
    # TODO(synk): nn.Dropout (training mode) not implemented; forward == eval mode.
    p = params
    B, S, d_model = x.shape
    S_enc = encoder_out.shape[1]
    rows = B * S
    x2 = x.reshape(rows, d_model)
    enc2 = encoder_out.reshape(B * S_enc, d_model)

    # LayerNorm scalars travel as traced (2,) f32 arrays -> SMEM (no trace-time float()).
    ln0 = jnp.stack([p["ln0_gamma"][0], p["ln0_beta"][0]]).astype(jnp.float32)
    ln1 = jnp.stack([p["ln1_gamma"][0], p["ln1_beta"][0]]).astype(jnp.float32)
    ln2 = jnp.stack([p["ln2_gamma"][0], p["ln2_beta"][0]]).astype(jnp.float32)

    # --- 1) self-attention: x = x + W_o(attn(LN(x), LN(x), LN(x), target_mask)) + b_o
    q, k, v = fused_projections(
        x2, [p["sa_wq"], p["sa_wk"], p["sa_wv"]], [p["sa_bq"], p["sa_bk"], p["sa_bv"]],
        ln_gb=ln0, eps=eps)
    d_att = q.shape[-1]
    x2 = attention_block(q.reshape(B, S, d_att), k.reshape(B, S, d_att),
                         v.reshape(B, S, d_att), target_mask,
                         p["sa_wo"], p["sa_bo"], x2.reshape(B, S, d_model),
                         h=h).reshape(rows, d_model)

    # --- 2) cross-attention: q from LN(x); k/v from the raw encoder output
    q = fused_projections(x2, [p["ca_wq"]], [p["ca_bq"]], ln_gb=ln1, eps=eps)
    k, v = fused_projections(enc2, [p["ca_wk"], p["ca_wv"]], [p["ca_bk"], p["ca_bv"]])
    x2 = attention_block(q.reshape(B, S, d_att), k.reshape(B, S_enc, d_att),
                         v.reshape(B, S_enc, d_att), src_mask,
                         p["ca_wo"], p["ca_bo"], x2.reshape(B, S, d_model),
                         h=h).reshape(rows, d_model)

    # --- 3) feed-forward sublayer, fully fused (LN + GEMM + relu + GEMM + residual)
    x2 = ln_ffn_residual(x2, p["ff_w1"], p["ff_b1"], p["ff_w2"], p["ff_b2"],
                         ln_gb=ln2, eps=eps)
    return x2.reshape(B, S, d_model)


# ---------------------------------------------------------------------------
# Pure-JAX reference (mirrors the PyTorch math, dropout = identity)
# ---------------------------------------------------------------------------
def _reference_decoder_block(params, x, encoder_out, src_mask, target_mask, *, h, eps=1e-6):
    HI = jax.lax.Precision.HIGHEST

    def ln(t, g, b):
        mu = jnp.mean(t, -1, keepdims=True)
        var = jnp.sum((t - mu) ** 2, -1, keepdims=True) / (t.shape[-1] - 1)
        return g * (t - mu) / jnp.sqrt(var + eps) + b

    def mha(q_in, k_in, v_in, mask, wq, bq, wk, bk, wv, bv, wo, bo):
        q = jnp.einsum("bsd,df->bsf", q_in, wq, precision=HI) + bq
        k = jnp.einsum("bsd,df->bsf", k_in, wk, precision=HI) + bk
        v = jnp.einsum("bsd,df->bsf", v_in, wv, precision=HI) + bv
        dk = q.shape[-1] // h
        outs = []
        for i in range(h):
            qi, ki, vi = (t[..., i * dk:(i + 1) * dk] for t in (q, k, v))
            s = jnp.einsum("bqd,bkd->bqk", qi, ki, precision=HI) / math.sqrt(dk)
            s = jnp.where(mask == 0, jnp.float32(-1e30), s)
            pr = jax.nn.softmax(s, axis=-1)
            outs.append(jnp.einsum("bqk,bkd->bqd", pr, vi, precision=HI))
        heads = jnp.concatenate(outs, axis=-1)
        return jnp.einsum("bsd,df->bsf", heads, wo, precision=HI) + bo

    p = params
    n = ln(x, p["ln0_gamma"][0], p["ln0_beta"][0])
    x = x + mha(n, n, n, target_mask, p["sa_wq"], p["sa_bq"], p["sa_wk"], p["sa_bk"],
                p["sa_wv"], p["sa_bv"], p["sa_wo"], p["sa_bo"])
    n = ln(x, p["ln1_gamma"][0], p["ln1_beta"][0])
    x = x + mha(n, encoder_out, encoder_out, src_mask, p["ca_wq"], p["ca_bq"], p["ca_wk"],
                p["ca_bk"], p["ca_wv"], p["ca_bv"], p["ca_wo"], p["ca_bo"])
    n = ln(x, p["ln2_gamma"][0], p["ln2_beta"][0])
    hid = jnp.maximum(jnp.einsum("bsd,df->bsf", n, p["ff_w1"], precision=HI) + p["ff_b1"], 0.0)
    ffn = jnp.einsum("bsd,df->bsf", hid, p["ff_w2"], precision=HI) + p["ff_b2"]
    return x + ffn


if __name__ == "__main__":
    B, S, d_model, d_att, h, d_ff = 2, 8, 32, 32, 4, 64
    keys = jax.random.split(jax.random.PRNGKey(0), 22)

    def nrm(kk, shape, scale=0.125):
        return scale * jax.random.normal(kk, shape, dtype=jnp.float32)

    # nn.Linear weights stored as (in, out): y = x @ W + b (== torch's x @ W.T + b)
    params = {
        "ln0_gamma": jnp.array([1.10], jnp.float32), "ln0_beta": jnp.array([-0.05], jnp.float32),
        "sa_wq": nrm(keys[0], (d_model, d_att)), "sa_bq": nrm(keys[1], (d_att,)),
        "sa_wk": nrm(keys[2], (d_model, d_att)), "sa_bk": nrm(keys[3], (d_att,)),
        "sa_wv": nrm(keys[4], (d_model, d_att)), "sa_bv": nrm(keys[5], (d_att,)),
        "sa_wo": nrm(keys[6], (d_att, d_model)), "sa_bo": nrm(keys[7], (d_model,)),
        "ln1_gamma": jnp.array([0.90], jnp.float32), "ln1_beta": jnp.array([0.02], jnp.float32),
        "ca_wq": nrm(keys[8], (d_model, d_att)), "ca_bq": nrm(keys[9], (d_att,)),
        "ca_wk": nrm(keys[10], (d_model, d_att)), "ca_bk": nrm(keys[11], (d_att,)),
        "ca_wv": nrm(keys[12], (d_model, d_att)), "ca_bv": nrm(keys[13], (d_att,)),
        "ca_wo": nrm(keys[14], (d_att, d_model)), "ca_bo": nrm(keys[15], (d_model,)),
        "ln2_gamma": jnp.array([1.05], jnp.float32), "ln2_beta": jnp.array([0.10], jnp.float32),
        "ff_w1": nrm(keys[16], (d_model, d_ff)), "ff_b1": nrm(keys[17], (d_ff,)),
        "ff_w2": nrm(keys[18], (d_ff, d_model)), "ff_b2": nrm(keys[19], (d_model,)),
    }
    x = jax.random.normal(keys[20], (B, S, d_model), jnp.float32)
    encoder_out = jax.random.normal(keys[21], (B, S, d_model), jnp.float32)

    causal = jnp.tril(jnp.ones((S, S), jnp.float32))
    target_mask = jnp.broadcast_to(causal, (B, S, S))
    src_mask = jnp.ones((B, S, S), jnp.float32).at[1, :, S - 2:].set(0.0)

    # params passed as a jit argument (traced) to exercise the gamma/beta SMEM path.
    fwd = jax.jit(lambda pp, xx, ee, sm, tm: decoder_block_forward(pp, xx, ee, sm, tm, h=h))
    y = jax.block_until_ready(fwd(params, x, encoder_out, src_mask, target_mask))

    ref = jax.block_until_ready(_reference_decoder_block(
        params, x, encoder_out, src_mask, target_mask, h=h))

    assert y.shape == ref.shape
    max_err = float(jnp.max(jnp.abs(y - ref)))
    # Tolerance accounts for the approximate (EUP) reciprocal in the softmax.
    assert jnp.allclose(y, ref, atol=1e-2, rtol=1e-2), \
        f"mismatch vs reference (max abs err {max_err})"
    print("KERNEL_OK")
</pallas_src>

<mosaic_0001>
module attributes {stable_mosaic.version = 11 : i64} {
  func.func @_attn_block_kernel(%arg0: i32, %arg1: memref<1x8x32xf32, #tpu.memory_space<vmem>>, %arg2: memref<1x8x32xf32, #tpu.memory_space<vmem>>, %arg3: memref<1x8x32xf32, #tpu.memory_space<vmem>>, %arg4: memref<1x8x8xf32, #tpu.memory_space<vmem>>, %arg5: memref<32x32xf32, #tpu.memory_space<vmem>>, %arg6: memref<1x32xf32, #tpu.memory_space<vmem>>, %arg7: memref<1x8x32xf32, #tpu.memory_space<vmem>>, %arg8: memref<1x8x32xf32, #tpu.memory_space<vmem>>) attributes {dimension_semantics = [#tpu.dimension_semantics<parallel>], iteration_bounds = array<i64: 2>, scalar_prefetch = 0 : i64, scratch_operands = 0 : i64, tpu.core_type = #tpu.core_type<tc>, window_params = [{transform_indices = @transform_0, window_bounds = array<i64: 1, 8, 32>}, {transform_indices = @transform_1, window_bounds = array<i64: 1, 8, 32>}, {transform_indices = @transform_2, window_bounds = array<i64: 1, 8, 32>}, {transform_indices = @transform_3, window_bounds = array<i64: 1, 8, 8>}, {pipeline_mode = #tpu.pipeline_mode<synchronous>, transform_indices = @transform_4, window_bounds = array<i64: 32, 32>}, {pipeline_mode = #tpu.pipeline_mode<synchronous>, transform_indices = @transform_5, window_bounds = array<i64: 1, 32>}, {transform_indices = @transform_6, window_bounds = array<i64: 1, 8, 32>}, {transform_indices = @transform_7, window_bounds = array<i64: 1, 8, 32>}]} {
    %c0 = arith.constant 0 : index
    %c0_0 = arith.constant 0 : index
    %c0_1 = arith.constant 0 : index
    %0 = vector.load %arg1[%c0, %c0_0, %c0_1] : memref<1x8x32xf32, #tpu.memory_space<vmem>>, vector<1x8x32xf32>
    %1 = vector.shape_cast %0 : vector<1x8x32xf32> to vector<8x32xf32>
    %c0_2 = arith.constant 0 : index
    %c0_3 = arith.constant 0 : index
    %c0_4 = arith.constant 0 : index
    %2 = vector.load %arg2[%c0_2, %c0_3, %c0_4] : memref<1x8x32xf32, #tpu.memory_space<vmem>>, vector<1x8x32xf32>
    %3 = vector.shape_cast %2 : vector<1x8x32xf32> to vector<8x32xf32>
    %c0_5 = arith.constant 0 : index
    %c0_6 = arith.constant 0 : index
    %c0_7 = arith.constant 0 : index
    %4 = vector.load %arg3[%c0_5, %c0_6, %c0_7] : memref<1x8x32xf32, #tpu.memory_space<vmem>>, vector<1x8x32xf32>
    %5 = vector.shape_cast %4 : vector<1x8x32xf32> to vector<8x32xf32>
    %c0_8 = arith.constant 0 : index
    %c0_9 = arith.constant 0 : index
    %c0_10 = arith.constant 0 : index
    %6 = vector.load %arg4[%c0_8, %c0_9, %c0_10] : memref<1x8x8xf32, #tpu.memory_space<vmem>>, vector<1x8x8xf32>
    %7 = vector.shape_cast %6 : vector<1x8x8xf32> to vector<8x8xf32>
    %cst = arith.constant 0.000000e+00 : f32
    %8 = vector.broadcast %cst : f32 to vector<8x8xf32>
    %9 = arith.cmpf oeq, %7, %8 : vector<8x8xf32>
    %c0_11 = arith.constant 0 : index
    %c0_12 = arith.constant 0 : index
    %c0_13 = arith.constant 0 : index
    %10 = vector.load %arg7[%c0_11, %c0_12, %c0_13] : memref<1x8x32xf32, #tpu.memory_space<vmem>>, vector<1x8x32xf32>
    %11 = vector.shape_cast %10 : vector<1x8x32xf32> to vector<8x32xf32>
    %c0_14 = arith.constant 0 : index
    %c0_15 = arith.constant 0 : index
    %12 = vector.load %arg6[%c0_14, %c0_15] : memref<1x32xf32, #tpu.memory_space<vmem>>, vector<1x32xf32>
    %13 = vector.broadcast %12 : vector<1x32xf32> to vector<8x32xf32>
    %14 = arith.addf %11, %13 : vector<8x32xf32>
    %15 = vector.extract_strided_slice %1 {offsets = [0, 0], sizes = [8, 8], strides = [1, 1]} : vector<8x32xf32> to vector<8x8xf32>
    %16 = vector.extract_strided_slice %3 {offsets = [0, 0], sizes = [8, 8], strides = [1, 1]} : vector<8x32xf32> to vector<8x8xf32>
    %17 = vector.extract_strided_slice %5 {offsets = [0, 0], sizes = [8, 8], strides = [1, 1]} : vector<8x32xf32> to vector<8x8xf32>
    %cst_16 = arith.constant dense<0.000000e+00> : vector<8x8xf32>
    %18 = tpu.matmul %15, %16, %cst_16 {dimension_numbers = #tpu.dot_dimension_numbers<[1], [1], [0], [0], [0, 0, 1, 0], [], []>} : vector<8x8xf32>, vector<8x8xf32>, vector<8x8xf32> -> vector<8x8xf32>
    %cst_17 = arith.constant 0.353553385 : f32
    %19 = vector.broadcast %cst_17 : f32 to vector<8x8xf32>
    %20 = arith.mulf %18, %19 : vector<8x8xf32>
    %cst_18 = arith.constant -1.000000e+30 : f32
    %21 = vector.broadcast %cst_18 : f32 to vector<8x8xf32>
    %22 = arith.select %9, %21, %20 : vector<8x8xi1>, vector<8x8xf32>
    %cst_19 = arith.constant dense<0xFF800000> : vector<8xf32>
    %23 = vector.multi_reduction <maximumf>, %22, %cst_19 [1] : vector<8x8xf32> to vector<8xf32>
    %24 = vector.shape_cast %23 : vector<8xf32> to vector<8x1xf32>
    %25 = vector.broadcast %24 : vector<8x1xf32> to vector<8x8xf32>
    %26 = arith.subf %22, %25 : vector<8x8xf32>
    %27 = math.exp %26 : vector<8x8xf32>
    %cst_20 = arith.constant dense<0.000000e+00> : vector<8xf32>
    %28 = vector.multi_reduction <add>, %27, %cst_20 [1] : vector<8x8xf32> to vector<8xf32>
    %29 = vector.shape_cast %28 : vector<8xf32> to vector<8x1xf32>
    %30 = tpu.reciprocal %29 {approx = true} : vector<8x1xf32> -> vector<8x1xf32>
    %31 = vector.broadcast %30 : vector<8x1xf32> to vector<8x8xf32>
    %32 = arith.mulf %27, %31 : vector<8x8xf32>
    %cst_21 = arith.constant dense<0.000000e+00> : vector<8x8xf32>
    %33 = tpu.matmul %32, %17, %cst_21 {dimension_numbers = #tpu.dot_dimension_numbers<[1], [0], [0], [1], [0, 0, 1, 1], [], []>} : vector<8x8xf32>, vector<8x8xf32>, vector<8x8xf32> -> vector<8x8xf32>
    %c0_22 = arith.constant 0 : index
    %c0_23 = arith.constant 0 : index
    %34 = vector.load %arg5[%c0_22, %c0_23] : memref<32x32xf32, #tpu.memory_space<vmem>>, vector<8x32xf32>
    %cst_24 = arith.constant dense<0.000000e+00> : vector<8x32xf32>
    %35 = tpu.matmul %33, %34, %cst_24 {dimension_numbers = #tpu.dot_dimension_numbers<[1], [0], [0], [1], [0, 0, 1, 1], [], []>} : vector<8x8xf32>, vector<8x32xf32>, vector<8x32xf32> -> vector<8x32xf32>
    %36 = arith.addf %14, %35 : vector<8x32xf32>
    %37 = vector.extract_strided_slice %1 {offsets = [0, 8], sizes = [8, 8], strides = [1, 1]} : vector<8x32xf32> to vector<8x8xf32>
    %38 = vector.extract_strided_slice %3 {offsets = [0, 8], sizes = [8, 8], strides = [1, 1]} : vector<8x32xf32> to vector<8x8xf32>
    %39 = vector.extract_strided_slice %5 {offsets = [0, 8], sizes = [8, 8], strides = [1, 1]} : vector<8x32xf32> to vector<8x8xf32>
    %cst_25 = arith.constant dense<0.000000e+00> : vector<8x8xf32>
    %40 = tpu.matmul %37, %38, %cst_25 {dimension_numbers = #tpu.dot_dimension_numbers<[1], [1], [0], [0], [0, 0, 1, 0], [], []>} : vector<8x8xf32>, vector<8x8xf32>, vector<8x8xf32> -> vector<8x8xf32>
    %cst_26 = arith.constant 0.353553385 : f32
    %41 = vector.broadcast %cst_26 : f32 to vector<8x8xf32>
    %42 = arith.mulf %40, %41 : vector<8x8xf32>
    %cst_27 = arith.constant -1.000000e+30 : f32
    %43 = vector.broadcast %cst_27 : f32 to vector<8x8xf32>
    %44 = arith.select %9, %43, %42 : vector<8x8xi1>, vector<8x8xf32>
    %cst_28 = arith.constant dense<0xFF800000> : vector<8xf32>
    %45 = vector.multi_reduction <maximumf>, %44, %cst_28 [1] : vector<8x8xf32> to vector<8xf32>
    %46 = vector.shape_cast %45 : vector<8xf32> to vector<8x1xf32>
    %47 = vector.broadcast %46 : vector<8x1xf32> to vector<8x8xf32>
    %48 = arith.subf %44, %47 : vector<8x8xf32>
    %49 = math.exp %48 : vector<8x8xf32>
    %cst_29 = arith.constant dense<0.000000e+00> : vector<8xf32>
    %50 = vector.multi_reduction <add>, %49, %cst_29 [1] : vector<8x8xf32> to vector<8xf32>
    %51 = vector.shape_cast %50 : vector<8xf32> to vector<8x1xf32>
    %52 = tpu.reciprocal %51 {approx = true} : vector<8x1xf32> -> vector<8x1xf32>
    %53 = vector.broadcast %52 : vector<8x1xf32> to vector<8x8xf32>
    %54 = arith.mulf %49, %53 : vector<8x8xf32>
    %cst_30 = arith.constant dense<0.000000e+00> : vector<8x8xf32>
    %55 = tpu.matmul %54, %39, %cst_30 {dimension_numbers = #tpu.dot_dimension_numbers<[1], [0], [0], [1], [0, 0, 1, 1], [], []>} : vector<8x8xf32>, vector<8x8xf32>, vector<8x8xf32> -> vector<8x8xf32>
    %c8 = arith.constant 8 : index
    %c0_31 = arith.constant 0 : index
    %56 = vector.load %arg5[%c8, %c0_31] : memref<32x32xf32, #tpu.memory_space<vmem>>, vector<8x32xf32>
    %cst_32 = arith.constant dense<0.000000e+00> : vector<8x32xf32>
    %57 = tpu.matmul %55, %56, %cst_32 {dimension_numbers = #tpu.dot_dimension_numbers<[1], [0], [0], [1], [0, 0, 1, 1], [], []>} : vector<8x8xf32>, vector<8x32xf32>, vector<8x32xf32> -> vector<8x32xf32>
    %58 = arith.addf %36, %57 : vector<8x32xf32>
    %59 = vector.extract_strided_slice %1 {offsets = [0, 16], sizes = [8, 8], strides = [1, 1]} : vector<8x32xf32> to vector<8x8xf32>
    %60 = vector.extract_strided_slice %3 {offsets = [0, 16], sizes = [8, 8], strides = [1, 1]} : vector<8x32xf32> to vector<8x8xf32>
    %61 = vector.extract_strided_slice %5 {offsets = [0, 16], sizes = [8, 8], strides = [1, 1]} : vector<8x32xf32> to vector<8x8xf32>
    %cst_33 = arith.constant dense<0.000000e+00> : vector<8x8xf32>
    %62 = tpu.matmul %59, %60, %cst_33 {dimension_numbers = #tpu.dot_dimension_numbers<[1], [1], [0], [0], [0, 0, 1, 0], [], []>} : vector<8x8xf32>, vector<8x8xf32>, vector<8x8xf32> -> vector<8x8xf32>
    %cst_34 = arith.constant 0.353553385 : f32
    %63 = vector.broadcast %cst_34 : f32 to vector<8x8xf32>
    %64 = arith.mulf %62, %63 : vector<8x8xf32>
    %cst_35 = arith.constant -1.000000e+30 : f32
    %65 = vector.broadcast %cst_35 : f32 to vector<8x8xf32>
    %66 = arith.select %9, %65, %64 : vector<8x8xi1>, vector<8x8xf32>
    %cst_36 = arith.constant dense<0xFF800000> : vector<8xf32>
    %67 = vector.multi_reduction <maximumf>, %66, %cst_36 [1] : vector<8x8xf32> to vector<8xf32>
    %68 = vector.shape_cast %67 : vector<8xf32> to vector<8x1xf32>
    %69 = vector.broadcast %68 : vector<8x1xf32> to vector<8x8xf32>
    %70 = arith.subf %66, %69 : vector<8x8xf32>
    %71 = math.exp %70 : vector<8x8xf32>
    %cst_37 = arith.constant dense<0.000000e+00> : vector<8xf32>
    %72 = vector.multi_reduction <add>, %71, %cst_37 [1] : vector<8x8xf32> to vector<8xf32>
    %73 = vector.shape_cast %72 : vector<8xf32> to vector<8x1xf32>
    %74 = tpu.reciprocal %73 {approx = true} : vector<8x1xf32> -> vector<8x1xf32>
    %75 = vector.broadcast %74 : vector<8x1xf32> to vector<8x8xf32>
    %76 = arith.mulf %71, %75 : vector<8x8xf32>
    %cst_38 = arith.constant dense<0.000000e+00> : vector<8x8xf32>
    %77 = tpu.matmul %76, %61, %cst_38 {dimension_numbers = #tpu.dot_dimension_numbers<[1], [0], [0], [1], [0, 0, 1, 1], [], []>} : vector<8x8xf32>, vector<8x8xf32>, vector<8x8xf32> -> vector<8x8xf32>
    %c16 = arith.constant 16 : index
    %c0_39 = arith.constant 0 : index
    %78 = vector.load %arg5[%c16, %c0_39] : memref<32x32xf32, #tpu.memory_space<vmem>>, vector<8x32xf32>
    %cst_40 = arith.constant dense<0.000000e+00> : vector<8x32xf32>
    %79 = tpu.matmul %77, %78, %cst_40 {dimension_numbers = #tpu.dot_dimension_numbers<[1], [0], [0], [1], [0, 0, 1, 1], [], []>} : vector<8x8xf32>, vector<8x32xf32>, vector<8x32xf32> -> vector<8x32xf32>
    %80 = arith.addf %58, %79 : vector<8x32xf32>
    %81 = vector.extract_strided_slice %1 {offsets = [0, 24], sizes = [8, 8], strides = [1, 1]} : vector<8x32xf32> to vector<8x8xf32>
    %82 = vector.extract_strided_slice %3 {offsets = [0, 24], sizes = [8, 8], strides = [1, 1]} : vector<8x32xf32> to vector<8x8xf32>
    %83 = vector.extract_strided_slice %5 {offsets = [0, 24], sizes = [8, 8], strides = [1, 1]} : vector<8x32xf32> to vector<8x8xf32>
    %cst_41 = arith.constant dense<0.000000e+00> : vector<8x8xf32>
    %84 = tpu.matmul %81, %82, %cst_41 {dimension_numbers = #tpu.dot_dimension_numbers<[1], [1], [0], [0], [0, 0, 1, 0], [], []>} : vector<8x8xf32>, vector<8x8xf32>, vector<8x8xf32> -> vector<8x8xf32>
    %cst_42 = arith.constant 0.353553385 : f32
    %85 = vector.broadcast %cst_42 : f32 to vector<8x8xf32>
    %86 = arith.mulf %84, %85 : vector<8x8xf32>
    %cst_43 = arith.constant -1.000000e+30 : f32
    %87 = vector.broadcast %cst_43 : f32 to vector<8x8xf32>
    %88 = arith.select %9, %87, %86 : vector<8x8xi1>, vector<8x8xf32>
    %cst_44 = arith.constant dense<0xFF800000> : vector<8xf32>
    %89 = vector.multi_reduction <maximumf>, %88, %cst_44 [1] : vector<8x8xf32> to vector<8xf32>
    %90 = vector.shape_cast %89 : vector<8xf32> to vector<8x1xf32>
    %91 = vector.broadcast %90 : vector<8x1xf32> to vector<8x8xf32>
    %92 = arith.subf %88, %91 : vector<8x8xf32>
    %93 = math.exp %92 : vector<8x8xf32>
    %cst_45 = arith.constant dense<0.000000e+00> : vector<8xf32>
    %94 = vector.multi_reduction <add>, %93, %cst_45 [1] : vector<8x8xf32> to vector<8xf32>
    %95 = vector.shape_cast %94 : vector<8xf32> to vector<8x1xf32>
    %96 = tpu.reciprocal %95 {approx = true} : vector<8x1xf32> -> vector<8x1xf32>
    %97 = vector.broadcast %96 : vector<8x1xf32> to vector<8x8xf32>
    %98 = arith.mulf %93, %97 : vector<8x8xf32>
    %cst_46 = arith.constant dense<0.000000e+00> : vector<8x8xf32>
    %99 = tpu.matmul %98, %83, %cst_46 {dimension_numbers = #tpu.dot_dimension_numbers<[1], [0], [0], [1], [0, 0, 1, 1], [], []>} : vector<8x8xf32>, vector<8x8xf32>, vector<8x8xf32> -> vector<8x8xf32>
    %c24 = arith.constant 24 : index
    %c0_47 = arith.constant 0 : index
    %100 = vector.load %arg5[%c24, %c0_47] : memref<32x32xf32, #tpu.memory_space<vmem>>, vector<8x32xf32>
    %cst_48 = arith.constant dense<0.000000e+00> : vector<8x32xf32>
    %101 = tpu.matmul %99, %100, %cst_48 {dimension_numbers = #tpu.dot_dimension_numbers<[1], [0], [0], [1], [0, 0, 1, 1], [], []>} : vector<8x8xf32>, vector<8x32xf32>, vector<8x32xf32> -> vector<8x32xf32>
    %102 = arith.addf %80, %101 : vector<8x32xf32>
    %c0_49 = arith.constant 0 : index
    %c0_50 = arith.constant 0 : index
    %c0_51 = arith.constant 0 : index
    %103 = vector.load %arg8[%c0_49, %c0_50, %c0_51] : memref<1x8x32xf32, #tpu.memory_space<vmem>>, vector<1x8x32xf32>
    %104 = vector.shape_cast %103 : vector<1x8x32xf32> to vector<8x32xf32>
    %105 = vector.shape_cast %102 : vector<8x32xf32> to vector<1x8x32xf32>
    tpu.vector_store %arg8[%c0_49, %c0_50, %c0_51], %105 {strides = array<i32>} : memref<1x8x32xf32, #tpu.memory_space<vmem>>, vector<1x8x32xf32>,
    return
  }
  func.func @transform_0(%arg0: i32) -> (i32, i32, i32) {
    %c0_i32 = arith.constant 0 : i32
    %c0_i32_0 = arith.constant 0 : i32
    %c0_i32_1 = arith.constant 0 : i32
    return %arg0, %c0_i32, %c0_i32_0 : i32, i32, i32
  }
  func.func @transform_1(%arg0: i32) -> (i32, i32, i32) {
    %c0_i32 = arith.constant 0 : i32
    %c0_i32_0 = arith.constant 0 : i32
    %c0_i32_1 = arith.constant 0 : i32
    return %arg0, %c0_i32, %c0_i32_0 : i32, i32, i32
  }
  func.func @transform_2(%arg0: i32) -> (i32, i32, i32) {
    %c0_i32 = arith.constant 0 : i32
    %c0_i32_0 = arith.constant 0 : i32
    %c0_i32_1 = arith.constant 0 : i32
    return %arg0, %c0_i32, %c0_i32_0 : i32, i32, i32
  }
  func.func @transform_3(%arg0: i32) -> (i32, i32, i32) {
    %c0_i32 = arith.constant 0 : i32
    %c0_i32_0 = arith.constant 0 : i32
    %c0_i32_1 = arith.constant 0 : i32
    return %arg0, %c0_i32, %c0_i32_0 : i32, i32, i32
  }
  func.func @transform_4(%arg0: i32) -> (i32, i32) {
    %c0_i32 = arith.constant 0 : i32
    %c0_i32_0 = arith.constant 0 : i32
    %c0_i32_1 = arith.constant 0 : i32
    return %c0_i32, %c0_i32_0 : i32, i32
  }
  func.func @transform_5(%arg0: i32) -> (i32, i32) {
    %c0_i32 = arith.constant 0 : i32
    %c0_i32_0 = arith.constant 0 : i32
    %c0_i32_1 = arith.constant 0 : i32
    return %c0_i32, %c0_i32_0 : i32, i32
  }
  func.func @transform_6(%arg0: i32) -> (i32, i32, i32) {
    %c0_i32 = arith.constant 0 : i32
    %c0_i32_0 = arith.constant 0 : i32
    %c0_i32_1 = arith.constant 0 : i32
    return %arg0, %c0_i32, %c0_i32_0 : i32, i32, i32
  }
  func.func @transform_7(%arg0: i32) -> (i32, i32, i32) {
    %c0_i32 = arith.constant 0 : i32
    %c0_i32_0 = arith.constant 0 : i32
    %c0_i32_1 = arith.constant 0 : i32
    return %arg0, %c0_i32, %c0_i32_0 : i32, i32, i32
  }
}

module attributes {stable_mosaic.version = 11 : i64} {
  func.func @_proj_kernel(%arg0: i32, %arg1: memref<2xf32, #tpu.memory_space<smem>>, %arg2: memref<8x32xf32, #tpu.memory_space<vmem>>, %arg3: memref<32x32xf32, #tpu.memory_space<vmem>>, %arg4: memref<1x32xf32, #tpu.memory_space<vmem>>, %arg5: memref<32x32xf32, #tpu.memory_space<vmem>>, %arg6: memref<1x32xf32, #tpu.memory_space<vmem>>, %arg7: memref<32x32xf32, #tpu.memory_space<vmem>>, %arg8: memref<1x32xf32, #tpu.memory_space<vmem>>, %arg9: memref<8x32xf32, #tpu.memory_space<vmem>>, %arg10: memref<8x32xf32, #tpu.memory_space<vmem>>, %arg11: memref<8x32xf32, #tpu.memory_space<vmem>>) attributes {dimension_semantics = [#tpu.dimension_semantics<parallel>], iteration_bounds = array<i64: 2>, scalar_prefetch = 0 : i64, scratch_operands = 0 : i64, tpu.core_type = #tpu.core_type<tc>, window_params = [{transform_indices = @transform_0, window_bounds = array<i64: 2>}, {transform_indices = @transform_1, window_bounds = array<i64: 8, 32>}, {pipeline_mode = #tpu.pipeline_mode<synchronous>, transform_indices = @transform_2, window_bounds = array<i64: 32, 32>}, {pipeline_mode = #tpu.pipeline_mode<synchronous>, transform_indices = @transform_3, window_bounds = array<i64: 1, 32>}, {pipeline_mode = #tpu.pipeline_mode<synchronous>, transform_indices = @transform_4, window_bounds = array<i64: 32, 32>}, {pipeline_mode = #tpu.pipeline_mode<synchronous>, transform_indices = @transform_5, window_bounds = array<i64: 1, 32>}, {pipeline_mode = #tpu.pipeline_mode<synchronous>, transform_indices = @transform_6, window_bounds = array<i64: 32, 32>}, {pipeline_mode = #tpu.pipeline_mode<synchronous>, transform_indices = @transform_7, window_bounds = array<i64: 1, 32>}, {transform_indices = @transform_8, window_bounds = array<i64: 8, 32>}, {transform_indices = @transform_9, window_bounds = array<i64: 8, 32>}, {transform_indices = @transform_10, window_bounds = array<i64: 8, 32>}]} {
    %c0 = arith.constant 0 : index
    %0 = memref.load %arg1[%c0] : memref<2xf32, #tpu.memory_space<smem>>
    %c1 = arith.constant 1 : index
    %1 = memref.load %arg1[%c1] : memref<2xf32, #tpu.memory_space<smem>>
    %c0_0 = arith.constant 0 : index
    %c0_1 = arith.constant 0 : index
    %2 = vector.load %arg2[%c0_0, %c0_1] : memref<8x32xf32, #tpu.memory_space<vmem>>, vector<8x32xf32>
    %cst = arith.constant dense<0.000000e+00> : vector<8xf32>
    %3 = vector.multi_reduction <add>, %2, %cst [1] : vector<8x32xf32> to vector<8xf32>
    %4 = vector.shape_cast %3 : vector<8xf32> to vector<8x1xf32>
    %cst_2 = arith.constant 3.200000e+01 : f32
    %5 = vector.broadcast %cst_2 : f32 to vector<8x1xf32>
    %6 = arith.divf %4, %5 : vector<8x1xf32>
    %7 = vector.broadcast %6 : vector<8x1xf32> to vector<8x32xf32>
    %8 = arith.subf %2, %7 : vector<8x32xf32>
    %9 = arith.mulf %8, %8 : vector<8x32xf32>
    %cst_3 = arith.constant dense<0.000000e+00> : vector<8xf32>
    %10 = vector.multi_reduction <add>, %9, %cst_3 [1] : vector<8x32xf32> to vector<8xf32>
    %11 = vector.shape_cast %10 : vector<8xf32> to vector<8x1xf32>
    %cst_4 = arith.constant 0.0322580636 : f32
    %12 = vector.broadcast %cst_4 : f32 to vector<8x1xf32>
    %13 = arith.mulf %11, %12 : vector<8x1xf32>
    %cst_5 = arith.constant 9.99999997E-7 : f32
    %14 = vector.broadcast %cst_5 : f32 to vector<8x1xf32>
    %15 = arith.addf %13, %14 : vector<8x1xf32>
    %16 = math.rsqrt %15 : vector<8x1xf32>
    %17 = vector.broadcast %16 : vector<8x1xf32> to vector<8x32xf32>
    %18 = arith.mulf %8, %17 : vector<8x32xf32>
    %19 = vector.broadcast %0 : f32 to vector<8x32xf32>
    %20 = arith.mulf %19, %18 : vector<8x32xf32>
    %21 = vector.broadcast %1 : f32 to vector<8x32xf32>
    %22 = arith.addf %20, %21 : vector<8x32xf32>
    %c0_6 = arith.constant 0 : index
    %c0_7 = arith.constant 0 : index
    %23 = vector.load %arg3[%c0_6, %c0_7] : memref<32x32xf32, #tpu.memory_space<vmem>>, vector<32x32xf32>
    %c0_8 = arith.constant 0 : index
    %c0_9 = arith.constant 0 : index
    %24 = vector.load %arg4[%c0_8, %c0_9] : memref<1x32xf32, #tpu.memory_space<vmem>>, vector<1x32xf32>
    %cst_10 = arith.constant dense<0.000000e+00> : vector<8x32xf32>
    %25 = tpu.matmul %22, %23, %cst_10 {dimension_numbers = #tpu.dot_dimension_numbers<[1], [0], [0], [1], [0, 0, 1, 1], [], []>} : vector<8x32xf32>, vector<32x32xf32>, vector<8x32xf32> -> vector<8x32xf32>
    %26 = vector.broadcast %24 : vector<1x32xf32> to vector<8x32xf32>
    %27 = arith.addf %25, %26 : vector<8x32xf32>
    %c0_11 = arith.constant 0 : index
    %c0_12 = arith.constant 0 : index
    %28 = vector.load %arg9[%c0_11, %c0_12] : memref<8x32xf32, #tpu.memory_space<vmem>>, vector<8x32xf32>
    tpu.vector_store %arg9[%c0_11, %c0_12], %27 {strides = array<i32>} : memref<8x32xf32, #tpu.memory_space<vmem>>, vector<8x32xf32>,
    %c0_13 = arith.constant 0 : index
    %c0_14 = arith.constant 0 : index
    %29 = vector.load %arg5[%c0_13, %c0_14] : memref<32x32xf32, #tpu.memory_space<vmem>>, vector<32x32xf32>
    %c0_15 = arith.constant 0 : index
    %c0_16 = arith.constant 0 : index
    %30 = vector.load %arg6[%c0_15, %c0_16] : memref<1x32xf32, #tpu.memory_space<vmem>>, vector<1x32xf32>
    %cst_17 = arith.constant dense<0.000000e+00> : vector<8x32xf32>
    %31 = tpu.matmul %22, %29, %cst_17 {dimension_numbers = #tpu.dot_dimension_numbers<[1], [0], [0], [1], [0, 0, 1, 1], [], []>} : vector<8x32xf32>, vector<32x32xf32>, vector<8x32xf32> -> vector<8x32xf32>
    %32 = vector.broadcast %30 : vector<1x32xf32> to vector<8x32xf32>
    %33 = arith.addf %31, %32 : vector<8x32xf32>
    %c0_18 = arith.constant 0 : index
    %c0_19 = arith.constant 0 : index
    %34 = vector.load %arg10[%c0_18, %c0_19] : memref<8x32xf32, #tpu.memory_space<vmem>>, vector<8x32xf32>
    tpu.vector_store %arg10[%c0_18, %c0_19], %33 {strides = array<i32>} : memref<8x32xf32, #tpu.memory_space<vmem>>, vector<8x32xf32>,
    %c0_20 = arith.constant 0 : index
    %c0_21 = arith.constant 0 : index
    %35 = vector.load %arg7[%c0_20, %c0_21] : memref<32x32xf32, #tpu.memory_space<vmem>>, vector<32x32xf32>
    %c0_22 = arith.constant 0 : index
    %c0_23 = arith.constant 0 : index
    %36 = vector.load %arg8[%c0_22, %c0_23] : memref<1x32xf32, #tpu.memory_space<vmem>>, vector<1x32xf32>
    %cst_24 = arith.constant dense<0.000000e+00> : vector<8x32xf32>
    %37 = tpu.matmul %22, %35, %cst_24 {dimension_numbers = #tpu.dot_dimension_numbers<[1], [0], [0], [1], [0, 0, 1, 1], [], []>} : vector<8x32xf32>, vector<32x32xf32>, vector<8x32xf32> -> vector<8x32xf32>
    %38 = vector.broadcast %36 : vector<1x32xf32> to vector<8x32xf32>
    %39 = arith.addf %37, %38 : vector<8x32xf32>
    %c0_25 = arith.constant 0 : index
    %c0_26 = arith.constant 0 : index
    %40 = vector.load %arg11[%c0_25, %c0_26] : memref<8x32xf32, #tpu.memory_space<vmem>>, vector<8x32xf32>
    tpu.vector_store %arg11[%c0_25, %c0_26], %39 {strides = array<i32>} : memref<8x32xf32, #tpu.memory_space<vmem>>, vector<8x32xf32>,
    return
  }
  func.func @transform_0(%arg0: i32) -> i32 {
    %c0_i32 = arith.constant 0 : i32
    %c0_i32_0 = arith.constant 0 : i32
    return %c0_i32 : i32
  }
  func.func @transform_1(%arg0: i32) -> (i32, i32) {
    %c0_i32 = arith.constant 0 : i32
    %c0_i32_0 = arith.constant 0 : i32
    return %arg0, %c0_i32 : i32, i32
  }
  func.func @transform_2(%arg0: i32) -> (i32, i32) {
    %c0_i32 = arith.constant 0 : i32
    %c0_i32_0 = arith.constant 0 : i32
    %c0_i32_1 = arith.constant 0 : i32
    return %c0_i32, %c0_i32_0 : i32, i32
  }
  func.func @transform_3(%arg0: i32) -> (i32, i32) {
    %c0_i32 = arith.constant 0 : i32
    %c0_i32_0 = arith.constant 0 : i32
    %c0_i32_1 = arith.constant 0 : i32
    return %c0_i32, %c0_i32_0 : i32, i32
  }
  func.func @transform_4(%arg0: i32) -> (i32, i32) {
    %c0_i32 = arith.constant 0 : i32
    %c0_i32_0 = arith.constant 0 : i32
    %c0_i32_1 = arith.constant 0 : i32
    return %c0_i32, %c0_i32_0 : i32, i32
  }
  func.func @transform_5(%arg0: i32) -> (i32, i32) {
    %c0_i32 = arith.constant 0 : i32
    %c0_i32_0 = arith.constant 0 : i32
    %c0_i32_1 = arith.constant 0 : i32
    return %c0_i32, %c0_i32_0 : i32, i32
  }
  func.func @transform_6(%arg0: i32) -> (i32, i32) {
    %c0_i32 = arith.constant 0 : i32
    %c0_i32_0 = arith.constant 0 : i32
    %c0_i32_1 = arith.constant 0 : i32
    return %c0_i32, %c0_i32_0 : i32, i32
  }
  func.func @transform_7(%arg0: i32) -> (i32, i32) {
    %c0_i32 = arith.constant 0 : i32
    %c0_i32_0 = arith.constant 0 : i32
    %c0_i32_1 = arith.constant 0 : i32
    return %c0_i32, %c0_i32_0 : i32, i32
  }
  func.func @transform_8(%arg0: i32) -> (i32, i32) {
    %c0_i32 = arith.constant 0 : i32
    %c0_i32_0 = arith.constant 0 : i32
    return %arg0, %c0_i32 : i32, i32
  }
  func.func @transform_9(%arg0: i32) -> (i32, i32) {
    %c0_i32 = arith.constant 0 : i32
    %c0_i32_0 = arith.constant 0 : i32
    return %arg0, %c0_i32 : i32, i32
  }
  func.func @transform_10(%arg0: i32) -> (i32, i32) {
    %c0_i32 = arith.constant 0 : i32
    %c0_i32_0 = arith.constant 0 : i32
    return %arg0, %c0_i32 : i32, i32
  }
}

module attributes {stable_mosaic.version = 11 : i64} {
  func.func @_proj_kernel(%arg0: i32, %arg1: memref<2xf32, #tpu.memory_space<smem>>, %arg2: memref<8x32xf32, #tpu.memory_space<vmem>>, %arg3: memref<32x32xf32, #tpu.memory_space<vmem>>, %arg4: memref<1x32xf32, #tpu.memory_space<vmem>>, %arg5: memref<8x32xf32, #tpu.memory_space<vmem>>) attributes {dimension_semantics = [#tpu.dimension_semantics<parallel>], iteration_bounds = array<i64: 2>, scalar_prefetch = 0 : i64, scratch_operands = 0 : i64, tpu.core_type = #tpu.core_type<tc>, window_params = [{transform_indices = @transform_0, window_bounds = array<i64: 2>}, {transform_indices = @transform_1, window_bounds = array<i64: 8, 32>}, {pipeline_mode = #tpu.pipeline_mode<synchronous>, transform_indices = @transform_2, window_bounds = array<i64: 32, 32>}, {pipeline_mode = #tpu.pipeline_mode<synchronous>, transform_indices = @transform_3, window_bounds = array<i64: 1, 32>}, {transform_indices = @transform_4, window_bounds = array<i64: 8, 32>}]} {
    %c0 = arith.constant 0 : index
    %0 = memref.load %arg1[%c0] : memref<2xf32, #tpu.memory_space<smem>>
    %c1 = arith.constant 1 : index
    %1 = memref.load %arg1[%c1] : memref<2xf32, #tpu.memory_space<smem>>
    %c0_0 = arith.constant 0 : index
    %c0_1 = arith.constant 0 : index
    %2 = vector.load %arg2[%c0_0, %c0_1] : memref<8x32xf32, #tpu.memory_space<vmem>>, vector<8x32xf32>
    %cst = arith.constant dense<0.000000e+00> : vector<8xf32>
    %3 = vector.multi_reduction <add>, %2, %cst [1] : vector<8x32xf32> to vector<8xf32>
    %4 = vector.shape_cast %3 : vector<8xf32> to vector<8x1xf32>
    %cst_2 = arith.constant 3.200000e+01 : f32
    %5 = vector.broadcast %cst_2 : f32 to vector<8x1xf32>
    %6 = arith.divf %4, %5 : vector<8x1xf32>
    %7 = vector.broadcast %6 : vector<8x1xf32> to vector<8x32xf32>
    %8 = arith.subf %2, %7 : vector<8x32xf32>
    %9 = arith.mulf %8, %8 : vector<8x32xf32>
    %cst_3 = arith.constant dense<0.000000e+00> : vector<8xf32>
    %10 = vector.multi_reduction <add>, %9, %cst_3 [1] : vector<8x32xf32> to vector<8xf32>
    %11 = vector.shape_cast %10 : vector<8xf32> to vector<8x1xf32>
    %cst_4 = arith.constant 0.0322580636 : f32
    %12 = vector.broadcast %cst_4 : f32 to vector<8x1xf32>
    %13 = arith.mulf %11, %12 : vector<8x1xf32>
    %cst_5 = arith.constant 9.99999997E-7 : f32
    %14 = vector.broadcast %cst_5 : f32 to vector<8x1xf32>
    %15 = arith.addf %13, %14 : vector<8x1xf32>
    %16 = math.rsqrt %15 : vector<8x1xf32>
    %17 = vector.broadcast %16 : vector<8x1xf32> to vector<8x32xf32>
    %18 = arith.mulf %8, %17 : vector<8x32xf32>
    %19 = vector.broadcast %0 : f32 to vector<8x32xf32>
    %20 = arith.mulf %19, %18 : vector<8x32xf32>
    %21 = vector.broadcast %1 : f32 to vector<8x32xf32>
    %22 = arith.addf %20, %21 : vector<8x32xf32>
    %c0_6 = arith.constant 0 : index
    %c0_7 = arith.constant 0 : index
    %23 = vector.load %arg3[%c0_6, %c0_7] : memref<32x32xf32, #tpu.memory_space<vmem>>, vector<32x32xf32>
    %c0_8 = arith.constant 0 : index
    %c0_9 = arith.constant 0 : index
    %24 = vector.load %arg4[%c0_8, %c0_9] : memref<1x32xf32, #tpu.memory_space<vmem>>, vector<1x32xf32>
    %cst_10 = arith.constant dense<0.000000e+00> : vector<8x32xf32>
    %25 = tpu.matmul %22, %23, %cst_10 {dimension_numbers = #tpu.dot_dimension_numbers<[1], [0], [0], [1], [0, 0, 1, 1], [], []>} : vector<8x32xf32>, vector<32x32xf32>, vector<8x32xf32> -> vector<8x32xf32>
    %26 = vector.broadcast %24 : vector<1x32xf32> to vector<8x32xf32>
    %27 = arith.addf %25, %26 : vector<8x32xf32>
    %c0_11 = arith.constant 0 : index
    %c0_12 = arith.constant 0 : index
    %28 = vector.load %arg5[%c0_11, %c0_12] : memref<8x32xf32, #tpu.memory_space<vmem>>, vector<8x32xf32>
    tpu.vector_store %arg5[%c0_11, %c0_12], %27 {strides = array<i32>} : memref<8x32xf32, #tpu.memory_space<vmem>>, vector<8x32xf32>,
    return
  }
  func.func @transform_0(%arg0: i32) -> i32 {
    %c0_i32 = arith.constant 0 : i32
    %c0_i32_0 = arith.constant 0 : i32
    return %c0_i32 : i32
  }
  func.func @transform_1(%arg0: i32) -> (i32, i32) {
    %c0_i32 = arith.constant 0 : i32
    %c0_i32_0 = arith.constant 0 : i32
    return %arg0, %c0_i32 : i32, i32
  }
  func.func @transform_2(%arg0: i32) -> (i32, i32) {
    %c0_i32 = arith.constant 0 : i32
    %c0_i32_0 = arith.constant 0 : i32
    %c0_i32_1 = arith.constant 0 : i32
    return %c0_i32, %c0_i32_0 : i32, i32
  }
  func.func @transform_3(%arg0: i32) -> (i32, i32) {
    %c0_i32 = arith.constant 0 : i32
    %c0_i32_0 = arith.constant 0 : i32
    %c0_i32_1 = arith.constant 0 : i32
    return %c0_i32, %c0_i32_0 : i32, i32
  }
  func.func @transform_4(%arg0: i32) -> (i32, i32) {
    %c0_i32 = arith.constant 0 : i32
    %c0_i32_0 = arith.constant 0 : i32
    return %arg0, %c0_i32 : i32, i32
  }
}

module attributes {stable_mosaic.version = 11 : i64} {
  func.func @_proj_kernel(%arg0: i32, %arg1: memref<8x32xf32, #tpu.memory_space<vmem>>, %arg2: memref<32x32xf32, #tpu.memory_space<vmem>>, %arg3: memref<1x32xf32, #tpu.memory_space<vmem>>, %arg4: memref<32x32xf32, #tpu.memory_space<vmem>>, %arg5: memref<1x32xf32, #tpu.memory_space<vmem>>, %arg6: memref<8x32xf32, #tpu.memory_space<vmem>>, %arg7: memref<8x32xf32, #tpu.memory_space<vmem>>) attributes {dimension_semantics = [#tpu.dimension_semantics<parallel>], iteration_bounds = array<i64: 2>, scalar_prefetch = 0 : i64, scratch_operands = 0 : i64, tpu.core_type = #tpu.core_type<tc>, window_params = [{transform_indices = @transform_0, window_bounds = array<i64: 8, 32>}, {pipeline_mode = #tpu.pipeline_mode<synchronous>, transform_indices = @transform_1, window_bounds = array<i64: 32, 32>}, {pipeline_mode = #tpu.pipeline_mode<synchronous>, transform_indices = @transform_2, window_bounds = array<i64: 1, 32>}, {pipeline_mode = #tpu.pipeline_mode<synchronous>, transform_indices = @transform_3, window_bounds = array<i64: 32, 32>}, {pipeline_mode = #tpu.pipeline_mode<synchronous>, transform_indices = @transform_4, window_bounds = array<i64: 1, 32>}, {transform_indices = @transform_5, window_bounds = array<i64: 8, 32>}, {transform_indices = @transform_6, window_bounds = array<i64: 8, 32>}]} {
    %c0 = arith.constant 0 : index
    %c0_0 = arith.constant 0 : index
    %0 = vector.load %arg1[%c0, %c0_0] : memref<8x32xf32, #tpu.memory_space<vmem>>, vector<8x32xf32>
    %c0_1 = arith.constant 0 : index
    %c0_2 = arith.constant 0 : index
    %1 = vector.load %arg2[%c0_1, %c0_2] : memref<32x32xf32, #tpu.memory_space<vmem>>, vector<32x32xf32>
    %c0_3 = arith.constant 0 : index
    %c0_4 = arith.constant 0 : index
    %2 = vector.load %arg3[%c0_3, %c0_4] : memref<1x32xf32, #tpu.memory_space<vmem>>, vector<1x32xf32>
    %cst = arith.constant dense<0.000000e+00> : vector<8x32xf32>
    %3 = tpu.matmul %0, %1, %cst {dimension_numbers = #tpu.dot_dimension_numbers<[1], [0], [0], [1], [0, 0, 1, 1], [], []>} : vector<8x32xf32>, vector<32x32xf32>, vector<8x32xf32> -> vector<8x32xf32>
    %4 = vector.broadcast %2 : vector<1x32xf32> to vector<8x32xf32>
    %5 = arith.addf %3, %4 : vector<8x32xf32>
    %c0_5 = arith.constant 0 : index
    %c0_6 = arith.constant 0 : index
    %6 = vector.load %arg6[%c0_5, %c0_6] : memref<8x32xf32, #tpu.memory_space<vmem>>, vector<8x32xf32>
    tpu.vector_store %arg6[%c0_5, %c0_6], %5 {strides = array<i32>} : memref<8x32xf32, #tpu.memory_space<vmem>>, vector<8x32xf32>,
    %c0_7 = arith.constant 0 : index
    %c0_8 = arith.constant 0 : index
    %7 = vector.load %arg4[%c0_7, %c0_8] : memref<32x32xf32, #tpu.memory_space<vmem>>, vector<32x32xf32>
    %c0_9 = arith.constant 0 : index
    %c0_10 = arith.constant 0 : index
    %8 = vector.load %arg5[%c0_9, %c0_10] : memref<1x32xf32, #tpu.memory_space<vmem>>, vector<1x32xf32>
    %cst_11 = arith.constant dense<0.000000e+00> : vector<8x32xf32>
    %9 = tpu.matmul %0, %7, %cst_11 {dimension_numbers = #tpu.dot_dimension_numbers<[1], [0], [0], [1], [0, 0, 1, 1], [], []>} : vector<8x32xf32>, vector<32x32xf32>, vector<8x32xf32> -> vector<8x32xf32>
    %10 = vector.broadcast %8 : vector<1x32xf32> to vector<8x32xf32>
    %11 = arith.addf %9, %10 : vector<8x32xf32>
    %c0_12 = arith.constant 0 : index
    %c0_13 = arith.constant 0 : index
    %12 = vector.load %arg7[%c0_12, %c0_13] : memref<8x32xf32, #tpu.memory_space<vmem>>, vector<8x32xf32>
    tpu.vector_store %arg7[%c0_12, %c0_13], %11 {strides = array<i32>} : memref<8x32xf32, #tpu.memory_space<vmem>>, vector<8x32xf32>,
    return
  }
  func.func @transform_0(%arg0: i32) -> (i32, i32) {
    %c0_i32 = arith.constant 0 : i32
    %c0_i32_0 = arith.constant 0 : i32
    return %arg0, %c0_i32 : i32, i32
  }
  func.func @transform_1(%arg0: i32) -> (i32, i32) {
    %c0_i32 = arith.constant 0 : i32
    %c0_i32_0 = arith.constant 0 : i32
    %c0_i32_1 = arith.constant 0 : i32
    return %c0_i32, %c0_i32_0 : i32, i32
  }
  func.func @transform_2(%arg0: i32) -> (i32, i32) {
    %c0_i32 = arith.constant 0 : i32
    %c0_i32_0 = arith.constant 0 : i32
    %c0_i32_1 = arith.constant 0 : i32
    return %c0_i32, %c0_i32_0 : i32, i32
  }
  func.func @transform_3(%arg0: i32) -> (i32, i32) {
    %c0_i32 = arith.constant 0 : i32
    %c0_i32_0 = arith.constant 0 : i32
    %c0_i32_1 = arith.constant 0 : i32
    return %c0_i32, %c0_i32_0 : i32, i32
  }
  func.func @transform_4(%arg0: i32) -> (i32, i32) {
    %c0_i32 = arith.constant 0 : i32
    %c0_i32_0 = arith.constant 0 : i32
    %c0_i32_1 = arith.constant 0 : i32
    return %c0_i32, %c0_i32_0 : i32, i32
  }
  func.func @transform_5(%arg0: i32) -> (i32, i32) {
    %c0_i32 = arith.constant 0 : i32
    %c0_i32_0 = arith.constant 0 : i32
    return %arg0, %c0_i32 : i32, i32
  }
  func.func @transform_6(%arg0: i32) -> (i32, i32) {
    %c0_i32 = arith.constant 0 : i32
    %c0_i32_0 = arith.constant 0 : i32
    return %arg0, %c0_i32 : i32, i32
  }
}

module attributes {stable_mosaic.version = 11 : i64} {
  func.func @_ln_ffn_residual_kernel(%arg0: i32, %arg1: memref<2xf32, #tpu.memory_space<smem>>, %arg2: memref<8x32xf32, #tpu.memory_space<vmem>>, %arg3: memref<32x64xf32, #tpu.memory_space<vmem>>, %arg4: memref<1x64xf32, #tpu.memory_space<vmem>>, %arg5: memref<64x32xf32, #tpu.memory_space<vmem>>, %arg6: memref<1x32xf32, #tpu.memory_space<vmem>>, %arg7: memref<8x32xf32, #tpu.memory_space<vmem>>) attributes {dimension_semantics = [#tpu.dimension_semantics<parallel>], iteration_bounds = array<i64: 2>, scalar_prefetch = 0 : i64, scratch_operands = 0 : i64, tpu.core_type = #tpu.core_type<tc>, window_params = [{transform_indices = @transform_0, window_bounds = array<i64: 2>}, {transform_indices = @transform_1, window_bounds = array<i64: 8, 32>}, {pipeline_mode = #tpu.pipeline_mode<synchronous>, transform_indices = @transform_2, window_bounds = array<i64: 32, 64>}, {pipeline_mode = #tpu.pipeline_mode<synchronous>, transform_indices = @transform_3, window_bounds = array<i64: 1, 64>}, {pipeline_mode = #tpu.pipeline_mode<synchronous>, transform_indices = @transform_4, window_bounds = array<i64: 64, 32>}, {pipeline_mode = #tpu.pipeline_mode<synchronous>, transform_indices = @transform_5, window_bounds = array<i64: 1, 32>}, {transform_indices = @transform_6, window_bounds = array<i64: 8, 32>}]} {
    %c0 = arith.constant 0 : index
    %c0_0 = arith.constant 0 : index
    %0 = vector.load %arg2[%c0, %c0_0] : memref<8x32xf32, #tpu.memory_space<vmem>>, vector<8x32xf32>
    %c0_1 = arith.constant 0 : index
    %1 = memref.load %arg1[%c0_1] : memref<2xf32, #tpu.memory_space<smem>>
    %c1 = arith.constant 1 : index
    %2 = memref.load %arg1[%c1] : memref<2xf32, #tpu.memory_space<smem>>
    %cst = arith.constant dense<0.000000e+00> : vector<8xf32>
    %3 = vector.multi_reduction <add>, %0, %cst [1] : vector<8x32xf32> to vector<8xf32>
    %4 = vector.shape_cast %3 : vector<8xf32> to vector<8x1xf32>
    %cst_2 = arith.constant 3.200000e+01 : f32
    %5 = vector.broadcast %cst_2 : f32 to vector<8x1xf32>
    %6 = arith.divf %4, %5 : vector<8x1xf32>
    %7 = vector.broadcast %6 : vector<8x1xf32> to vector<8x32xf32>
    %8 = arith.subf %0, %7 : vector<8x32xf32>
    %9 = arith.mulf %8, %8 : vector<8x32xf32>
    %cst_3 = arith.constant dense<0.000000e+00> : vector<8xf32>
    %10 = vector.multi_reduction <add>, %9, %cst_3 [1] : vector<8x32xf32> to vector<8xf32>
    %11 = vector.shape_cast %10 : vector<8xf32> to vector<8x1xf32>
    %cst_4 = arith.constant 0.0322580636 : f32
    %12 = vector.broadcast %cst_4 : f32 to vector<8x1xf32>
    %13 = arith.mulf %11, %12 : vector<8x1xf32>
    %cst_5 = arith.constant 9.99999997E-7 : f32
    %14 = vector.broadcast %cst_5 : f32 to vector<8x1xf32>
    %15 = arith.addf %13, %14 : vector<8x1xf32>
    %16 = math.rsqrt %15 : vector<8x1xf32>
    %17 = vector.broadcast %16 : vector<8x1xf32> to vector<8x32xf32>
    %18 = arith.mulf %8, %17 : vector<8x32xf32>
    %19 = vector.broadcast %1 : f32 to vector<8x32xf32>
    %20 = arith.mulf %19, %18 : vector<8x32xf32>
    %21 = vector.broadcast %2 : f32 to vector<8x32xf32>
    %22 = arith.addf %20, %21 : vector<8x32xf32>
    %c0_6 = arith.constant 0 : index
    %c0_7 = arith.constant 0 : index
    %23 = vector.load %arg3[%c0_6, %c0_7] : memref<32x64xf32, #tpu.memory_space<vmem>>, vector<32x64xf32>
    %cst_8 = arith.constant dense<0.000000e+00> : vector<8x64xf32>
    %24 = tpu.matmul %22, %23, %cst_8 {dimension_numbers = #tpu.dot_dimension_numbers<[1], [0], [0], [1], [0, 0, 1, 1], [], []>} : vector<8x32xf32>, vector<32x64xf32>, vector<8x64xf32> -> vector<8x64xf32>
    %c0_9 = arith.constant 0 : index
    %c0_10 = arith.constant 0 : index
    %25 = vector.load %arg4[%c0_9, %c0_10] : memref<1x64xf32, #tpu.memory_space<vmem>>, vector<1x64xf32>
    %26 = vector.broadcast %25 : vector<1x64xf32> to vector<8x64xf32>
    %27 = arith.addf %24, %26 : vector<8x64xf32>
    %cst_11 = arith.constant 0.000000e+00 : f32
    %28 = vector.broadcast %cst_11 : f32 to vector<8x64xf32>
    %29 = arith.maximumf %27, %28 : vector<8x64xf32>
    %c0_12 = arith.constant 0 : index
    %c0_13 = arith.constant 0 : index
    %30 = vector.load %arg5[%c0_12, %c0_13] : memref<64x32xf32, #tpu.memory_space<vmem>>, vector<64x32xf32>
    %cst_14 = arith.constant dense<0.000000e+00> : vector<8x32xf32>
    %31 = tpu.matmul %29, %30, %cst_14 {dimension_numbers = #tpu.dot_dimension_numbers<[1], [0], [0], [1], [0, 0, 1, 1], [], []>} : vector<8x64xf32>, vector<64x32xf32>, vector<8x32xf32> -> vector<8x32xf32>
    %c0_15 = arith.constant 0 : index
    %c0_16 = arith.constant 0 : index
    %32 = vector.load %arg6[%c0_15, %c0_16] : memref<1x32xf32, #tpu.memory_space<vmem>>, vector<1x32xf32>
    %33 = vector.broadcast %32 : vector<1x32xf32> to vector<8x32xf32>
    %34 = arith.addf %31, %33 : vector<8x32xf32>
    %35 = arith.addf %0, %34 : vector<8x32xf32>
    %c0_17 = arith.constant 0 : index
    %c0_18 = arith.constant 0 : index
    %36 = vector.load %arg7[%c0_17, %c0_18] : memref<8x32xf32, #tpu.memory_space<vmem>>, vector<8x32xf32>
    tpu.vector_store %arg7[%c0_17, %c0_18], %35 {strides = array<i32>} : memref<8x32xf32, #tpu.memory_space<vmem>>, vector<8x32xf32>,
    return
  }
  func.func @transform_0(%arg0: i32) -> i32 {
    %c0_i32 = arith.constant 0 : i32
    %c0_i32_0 = arith.constant 0 : i32
    return %c0_i32 : i32
  }
  func.func @transform_1(%arg0: i32) -> (i32, i32) {
    %c0_i32 = arith.constant 0 : i32
    %c0_i32_0 = arith.constant 0 : i32
    return %arg0, %c0_i32 : i32, i32
  }
  func.func @transform_2(%arg0: i32) -> (i32, i32) {
    %c0_i32 = arith.constant 0 : i32
    %c0_i32_0 = arith.constant 0 : i32
    %c0_i32_1 = arith.constant 0 : i32
    return %c0_i32, %c0_i32_0 : i32, i32
  }
  func.func @transform_3(%arg0: i32) -> (i32, i32) {
    %c0_i32 = arith.constant 0 : i32
    %c0_i32_0 = arith.constant 0 : i32
    %c0_i32_1 = arith.constant 0 : i32
    return %c0_i32, %c0_i32_0 : i32, i32
  }
  func.func @transform_4(%arg0: i32) -> (i32, i32) {
    %c0_i32 = arith.constant 0 : i32
    %c0_i32_0 = arith.constant 0 : i32
    %c0_i32_1 = arith.constant 0 : i32
    return %c0_i32, %c0_i32_0 : i32, i32
  }
  func.func @transform_5(%arg0: i32) -> (i32, i32) {
    %c0_i32 = arith.constant 0 : i32
    %c0_i32_0 = arith.constant 0 : i32
    %c0_i32_1 = arith.constant 0 : i32
    return %c0_i32, %c0_i32_0 : i32, i32
  }
  func.func @transform_6(%arg0: i32) -> (i32, i32) {
    %c0_i32 = arith.constant 0 : i32
    %c0_i32_0 = arith.constant 0 : i32
    return %arg0, %c0_i32 : i32, i32
  }
}

</mosaic_0001>

<bundles_post_ra>
// kernel: _lambda_.7
= control target key start
LH: loop header
LB: loop body
LE: loop exit
PB: predicated region body
PF: predicated region fallthrough
CT: control target
= control target key end

     0   :  { %12 = vsyncpa [#allocation3], 0  ;;  %s1310_s0 = inlined_call_operand.vmem [shape: f32[2,8,32], index: 0, kind: input, shape index: {}]   ;;  %s1311_s1 = inlined_call_operand.vmem [shape: f32[2,8,32], index: 1, kind: input, shape index: {}]   ;;  %s1312_s2 = inlined_call_operand.vmem [shape: f32[2,8,32], index: 2, kind: input, shape index: {}]   ;;  %s1313_s3 = inlined_call_operand.hbm [shape: f32[2,8,8], index: 3, kind: input, shape index: {}]   ;;  %s1314_s4 = inlined_call_operand.hbm [shape: f32[32,32], index: 4, kind: input, shape index: {}]   ;;  %s1315_s5 = inlined_call_operand.vmem [shape: f32[1,32], index: 5, kind: input, shape index: {}]   ;;  %s1316_s6 = inlined_call_operand.vmem [shape: f32[2,8,32], index: 6, kind: input, shape index: {}]   ;;  %s1317_s7 = inlined_call_operand.vmem [shape: f32[2,8,32], index: 7, kind: output, shape index: {}]  }
   0x1   :  { %14 = vsyncpa [#allocation3 + $0x1], 0 }
   0x2   :  { %15 = vsyncpa [#allocation5], 0  ;;  %s1132_s24 = smov 0   ;;  %s1134_s25 = smov 0  }
   0x3   :  { %s1136_s26 = smov 0   ;;  %s1138_s27 = smov 0  }
   0x4 LB: > { %s235_s30 = sshll.u32 %s1314_s4, 4  ;;  %s1154_s8 = sadd.s32 4294967295, %s1084_s27   ;;  %s1084_s27 = sphi %s1138_s27, %s1324_s27   ;;  %s1080_s26 = sphi %s1136_s26, %s1323_s26   ;;  %s1076_s25 = sphi %s1134_s25, %s1322_s25   ;;  %s1072_s24 = sphi %s1132_s24, %s1321_s24   ;;  %s236_s30 = int_to_ptr.hbm [resolvable:$true] %s235_s30 }
   0x5   : > { %p883_p0 = scmp.ge.s32.totalorder %s1084_s27, 1  ;;  %p120_p1 = scmp.eq.s32.totalorder %s1154_s8, 0 }
   0x6   : > { %p224_p2 = scmp.lt.s32.totalorder %s1084_s27, 3  ;;  %s1086_s10 = smov [#allocation4]  }
   0x7   : > { %s237_s11 = sshll.u32 %s1086_s10, 4  ;;  %s1087_s12 = smov 128   ;;  %s238_s11 = int_to_ptr.vmem [resolvable:$true] %s237_s11 }
   0x8   : > { %p1159_p3 = pnand %p883_p0, %p224_p2  ;;  %s1088_s13 = smov 8  }
   0x9   : > { %s1168_s14 = sadd.s32 1, %s1084_s27   ;;  %s106_s16 = sadd.s32 1, %s1080_s26 }
   0xa   : > { %p920_p4 = pneg %p1159_p3  ;;  %s103_s15 = ssub.s32 %s1084_s27, %s1168_s14 }
   0xb   : > { %p104_p6 = scmp.eq.s32.totalorder %s103_s15, 0  ;;  %p113_p7 = scmp.ne.s32.totalorder %s1080_s26, %s1076_s25 }
   0xc   : > { %p921_p5 = pnand %p920_p4, %p120_p1  ;;  %p114_p8 = scmp.eq.s32.totalorder %s1084_s27, 0 }
   0xd   : > { %p119_p9 = scmp.ne.s32.totalorder %s1076_s25, %s1072_s24  ;;  %p929_p12 = scmp.lt.s32.totalorder %s1084_s27, 2 }
   0xe   : > { %923 = dma.hbm_to_vmem [thread:$0]  (!%p921_p5), %s236_s30, 512, %s238_s11, [#allocation5], %s1087_s12, %s1087_s12, %s1088_s13  }
   0xf   : > { %s1178_s17 = scalar_select %p104_p6, %s1080_s26, %s106_s16  }
  0x10   : > { %p115_p10 = por %p114_p8, %p113_p7  ;;  %p1182_p11 = por %p120_p1, %p119_p9 }
  0x11   : > { %s275_s19 = sand.u32 1, %s1080_s26   ;;  %s887_s21 = sshll.u32 %s1084_s27, 3 }
  0x12   : > { %s886_s20 = sshll.u32 %s275_s19, 3  ;;  %s283_s28 = scalar_lea.hbm %s1313_s3, %s887_s21 }
  0x13   : > { %s279_s29 = scalar_lea.vmem [#allocation2], %s886_s20  ;;  %s285_s10 = sshll.u32 %s283_s28, 4  ;;  %s286_s10 = int_to_ptr.hbm [resolvable:$true] %s285_s10 }
  0x14   : > { %s287_s30 = sshll.u32 %s279_s29, 4  ;;  %p1192_p13 = pnand %p929_p12, %p115_p10  ;;  %s288_s30 = int_to_ptr.vmem [resolvable:$true] %s287_s30 }
  0x15   : > { %s276_s11 = scalar_lea.sflag [#allocation3], %s275_s19  ;;  %s1016_s12 = sshra.s32 %s286_s10, 4  ;;  %s1017_s12 = int_to_ptr.hbm [resolvable:$true] %s1016_s12 }
  0x16   : > { %s1018_s13 = scalar_lea.hbm %s1017_s12, 8  ;;  %p1020_p2 = pneg %p1192_p13 }
  0x17   : > { %p1019_p0 = scmp.ne.s32.totalorder %s1017_s12, %s1018_s13  ;;  %s1023_s16 = scalar_lea.hbm %s1313_s3, 16 }
  0x18   : > { %p1024_p6 = scmp.lt.s32.totalorder %s1017_s12, %s1313_s3  ;;  %p1025_p7 = scmp.lt.s32.totalorder %s1023_s16, %s1018_s13 }
  0x19   : > { %p1021_p4 = pnand %p1020_p2, %p1019_p0 }
  0x1a   : > { %p1026_p8 = por %p1025_p7, %p1024_p6 }
  0x1b   : > { %p1022_p5 = pneg %p1021_p4 }
  0x1d   : > { %p1027_p9 = pnand %p1026_p8, %p1022_p5 }
  0x1f   : > { %1030 = shalt.err (!%p1027_p9)
}
  0x20   : > { %927 = dma.hbm_to_vmem [thread:$0]  (!%p1192_p13), %s286_s10, 128, %s288_s30, %s276_s11  }
  0x21   : > { %303 = sbr.rel (%p1159_p3) target bundleno = 1343 (0x53f), region = 48  ;;  %s305_s19 = sand.u32 (!%p1159_p3), 1, %s1076_s25  }
  0x22   : > { %s1209_s22 = sshll.u32 (!%p1159_p3), %s305_s19, 3  ;;  %s306_s23 = scalar_lea.sflag (!%p1159_p3), [#allocation3], %s305_s19 }
  0x23   : > { %s309_s28 = scalar_lea.vmem (!%p1159_p3), [#allocation2], %s1209_s22 }
  0x26   : > { %1063 = dma.done.wait (%p1182_p11), %s306_s23, 128  }
  0x27   : > { %1065 = vsyncadd (%p1182_p11), %s306_s23, 4294967168 }
  0x28   : > { %1067 = dma.done.wait (%p120_p1), [#allocation5], 512  }
  0x29   : > { %1069 = vsyncadd (%p120_p1), [#allocation5], 4294966784  ;;  %p361_p3 = scmp.lt.s32.totalorder %s1154_s8, 1  ;;  %vm392_vm0 = vcmask 64512   ;;  %s1089_s15 = smov 120   ;;  %v1251_v5 = vld [vmem:[%s309_s28] sm:$0xff] }
  0x2a   : > { %vm385_vm1 = vcmp.eq.f32.partialorder %v1251_v5, 0.0  ;;  %s1091_s16 = smov 104   ;;  %v455_v39 = vld [vmem:[#allocation4] sm:$0xff]  ;;  %v548_v41 = vld [vmem:[#allocation4 + $0x8] sm:$0xff]  ;;  %v640_v50 = vld [vmem:[#allocation4 + $0x10] sm:$0xff]  ;;  %vm757_vm2 = vcmask 261120  }
  0x2b   : > { %s1326_s8 = smov (!%p361_p3, %s1154_s8), 1  ;;  %474 = vmatpush.msra.mxu2 %v455_v39 }
  0x2c   : > { %s1222_s9 = sshll.u32 %s1326_s8, 3  ;;  %s1090_s8 = smov 112  }
  0x2d   : > { %s368_s18 = scalar_lea.vmem %s1311_s1, %s1222_s9  ;;  %s364_s11 = scalar_lea.vmem %s1310_s0, %s1222_s9  ;;  %567 = vmatpush.msrb.mxu2 %v548_v41 }
  0x2e   : > { %s372_s27 = scalar_lea.vmem %s1312_s2, %s1222_s9  ;;  %v382_v0 = vld [vmem:[%s368_s18] sm:$0xff]  ;;  %s376_s19 = scalar_lea.vmem %s1316_s6, %s1222_s9 }
  0x2f   : > { %482 = vrot.lane.b32.xlu0 %v382_v0, %s1089_s15  ;;  %896 = vmatpush.xpose.msk.msra.mxu0 %vm392_vm0, %v382_v0  ;;  %v1237_v1 = vld [vmem:[%s364_s11] sm:$0xff]  ;;  %s380_s30 = scalar_lea.vmem %s1317_s7, %s1222_s9 }
  0x30   : > { %v1239_v2 = vld [vmem:[%s372_s27] sm:$0xff] }
  0x31   : > { %450 = vmatpush.msra.mxu1 %v1239_v2 }
  0x32   : > { %897 = vmatmul.msk.f32.vlgmr.msra.gmra.mxu0 %vm392_vm0, %v1237_v1 }
  0x37   : > { %480 = vrot.lane.b32.xlu0 %v1237_v1, %s1089_s15 }
  0x3f   : > { %522 = vrot.lane.b32.xlu0 %v1239_v2, %s1089_s15 }
  0x47   : > { %575 = vrot.lane.b32.xlu0 %v382_v0, %s1090_s8 }
  0x4f   : > { %573 = vrot.lane.b32.xlu0 %v1237_v1, %s1090_s8 }
  0xa1   : > { %v483_v3 = vpop.permute.xlu0 %482 }
  0xa2   : > { %900 = vmatpush.xpose.msk.msra.mxu3 %vm392_vm0, %v483_v3 }
  0xa9   : > { %v481_v4 = vpop.permute.xlu0 %480 }
  0xaa   : > { %901 = vmatmul.msk.f32.vlgmr.msra.gmra.mxu3 %vm392_vm0, %v481_v4 }
  0xaf   : > { %v416_v6 = vpop.f32.mrf.mxu0 }
  0xb0   : > { %v419_v7 = vmul.f32 0.35355338, %v416_v6 }
  0xb1   : > { %v523_v8 = vpop.permute.xlu0 %522 }
  0xb2   : > { %v420_v9 = vsel %vm385_vm1, -1e+30, %v419_v7  ;;  %543 = vmatpush.msrb.mxu1 %v523_v8  ;;  %v969_v7 = vld [vmem:[%s1315_s5] ss:$0 sm:$0xff] }
  0xb3   : > { %v421_v10 = vsel %vm392_vm0, %v420_v9, -inf  ;;  %v386_v8 = vld [vmem:[%s376_s19] sm:$0xff] }
  0xb4   : > { %422 = vmax.xlane.f32.xlu1 %v421_v10 }
  0xb9   : > { %v576_v11 = vpop.permute.xlu0 %575 }
  0xba   : > { %904 = vmatpush.xpose.msk.msrb.mxu0 %vm392_vm0, %v576_v11 }
  0xc1   : > { %v574_v12 = vpop.permute.xlu0 %573 }
  0xc2   : > { %905 = vmatmul.msk.f32.vlgmr.msrb.gmra.mxu0 %vm392_vm0, %v574_v12 }
 0x127   : > { %v423_v13 = vpop.xlane.xlu1 %422 }
 0x128   : > { %v424_v14 = vsub.f32 %v420_v9, %v423_v13  ;;  %v391_v9 = vadd.f32 %v969_v7, %v386_v8 }
 0x12a   : > { %v425_v15 = vmul.f32 1.442695, %v424_v14 }
 0x12c   : > { %970 = vpow2.f32 %v425_v15 }
 0x12d   : > { %v505_v16 = vpop.f32.mrf.mxu3 }
 0x12e   : > { %v508_v17 = vmul.f32 0.35355338, %v505_v16 }
 0x130   : > { %v509_v18 = vsel %vm385_vm1, -1e+30, %v508_v17 }
 0x131   : > { %v510_v19 = vsel %vm392_vm0, %v509_v18, -inf }
 0x132   : > { %v971_v20 = vpop.eup %970  ;;  %511 = vmax.xlane.f32.xlu1 %v510_v19 }
 0x133   : > { %v427_v21 = vsel %vm392_vm0, %v971_v20, 0.0 }
 0x134   : > { %428 = vadd.xlane.f32.xlu2 %v427_v21 }
 0x13f   : > { %v598_v22 = vpop.f32.mrf.mxu0 }
 0x140   : > { %v601_v23 = vmul.f32 0.35355338, %v598_v22 }
 0x142   : > { %v602_v24 = vsel %vm385_vm1, -1e+30, %v601_v23 }
 0x143   : > { %v603_v25 = vsel %vm392_vm0, %v602_v24, -inf }
 0x144   : > { %604 = vmax.xlane.f32.xlu0 %v603_v25 }
 0x14b   : > { %667 = vrot.lane.b32.xlu1 %v382_v0, %s1091_s16 }
 0x158   : > { %614 = vrot.lane.b32.xlu0 %v1239_v2, %s1090_s8 }
 0x1a5   : > { %v512_v26 = vpop.xlane.xlu1 %511 }
 0x1a6   : > { %v513_v27 = vsub.f32 %v509_v18, %v512_v26 }
 0x1a7   : > { %v429_v28 = vpop.xlane.xlu2 %428 }
 0x1a8   : > { %v514_v29 = vmul.f32 1.442695, %v513_v27  ;;  %972 = vrcp.f32 %v429_v28 }
 0x1aa   : > { %974 = vpow2.f32 %v514_v29 }
 0x1ae   : > { %v973_v30 = vpop.eup %972 }
 0x1af   : > { %v431_v31 = vmul.f32 %v973_v30, %v971_v20 }
 0x1b0   : > { %v975_v32 = vpop.eup %974 }
 0x1b1   : > { %898 = vmatmul.msk.f32.vlgmr.msra.gmra.mxu1 %vm392_vm0, %v431_v31  ;;  %v516_v33 = vsel %vm392_vm0, %v975_v32, 0.0 }
 0x1b2   : > { %517 = vadd.xlane.f32.xlu2 %v516_v33  ;;  %659 = vmatpush.msra.mxu1 %v640_v50 }
 0x1b7   : > { %v605_v34 = vpop.xlane.xlu0 %604 }
 0x1b8   : > { %v606_v35 = vsub.f32 %v602_v24, %v605_v34 }
 0x1ba   : > { %v607_v36 = vmul.f32 1.442695, %v606_v35 }
 0x1bc   : > { %976 = vpow2.f32 %v607_v36 }
 0x1bd   : > { %v668_v45 = vpop.permute.xlu1 %667 }
 0x1c2   : > { %v977_v37 = vpop.eup %976 }
 0x1c3   : > { %v609_v38 = vsel %vm392_vm0, %v977_v37, 0.0 }
 0x1c4   : > { %610 = vadd.xlane.f32.xlu1 %v609_v38 }
 0x1ca   : > { %665 = vrot.lane.b32.xlu2 %v1237_v1, %s1091_s16  ;;  %v615_v40 = vpop.permute.xlu0 %614 }
 0x1cb   : > { %635 = vmatpush.msrb.mxu3 %v615_v40 }
 0x1dd   : > { %706 = vrot.lane.b32.xlu1 %v1239_v2, %s1091_s16  ;;  %v732_v2 = vld [vmem:[#allocation4 + $0x18] sm:$0xff] }
 0x1de   : > { %751 = vmatpush.msra.mxu3 %v732_v2 }
 0x225   : > { %v518_v42 = vpop.xlane.xlu2 %517 }
 0x226   : > { %978 = vrcp.f32 %v518_v42 }
 0x22c   : > { %v979_v43 = vpop.eup %978 }
 0x22d   : > { %v520_v44 = vmul.f32 %v979_v43, %v975_v32  ;;  %v666_v52 = vpop.permute.xlu2 %665 }
 0x22e   : > { %v452_v46 = vpop.f32.mrf.mxu1 }
 0x22f   : > { %899 = vmatmul.msk.f32.vlgmr.msra.gmra.mxu2 %vm392_vm0, %v452_v46  ;;  %902 = vmatmul.msk.f32.vlgmr.msrb.gmra.mxu1 %vm392_vm0, %v520_v44 }
 0x230   : > { %908 = vmatpush.xpose.msk.msra.mxu2 %vm392_vm0, %v668_v45 }
 0x237   : > { %v611_v47 = vpop.xlane.xlu1 %610 }
 0x238   : > { %980 = vrcp.f32 %v611_v47 }
 0x23e   : > { %v981_v48 = vpop.eup %980 }
 0x23f   : > { %v613_v49 = vmul.f32 %v981_v48, %v977_v37 }
 0x241   : > { %906 = vmatmul.msk.f32.vlgmr.msrb.gmra.mxu3 %vm392_vm0, %v613_v49 }
 0x24f   : > { %v707_v1 = vpop.permute.xlu1 %706 }
 0x250   : > { %727 = vmatpush.msra.mxu0 %v707_v1 }
 0x2ac   : > { %v545_v51 = vpop.f32.mrf.mxu1 }
 0x2ad   : > { %903 = vmatmul.msk.f32.vlgmr.msrb.gmra.mxu2 %vm392_vm0, %v545_v51 }
 0x2b2   : > { %v476_v54 = vpop.f32.mrf.mxu2 }
 0x2b3   : > { %v479_v10 = vadd.f32 %v476_v54, %v391_v9 }
 0x2b5   : > { %909 = vmatmul.msk.f32.vlgmr.msra.gmra.mxu2 %vm392_vm0, %v666_v52 }
 0x2c4   : > { %v637_v53 = vpop.f32.mrf.mxu3 }
 0x2c5   : > { %907 = vmatmul.msk.f32.vlgmr.msra.gmra.mxu1 %vm392_vm0, %v637_v53 }
 0x330   : > { %v569_v55 = vpop.f32.mrf.mxu2 }
 0x331   : > { %v572_v12 = vadd.f32 %v569_v55, %v479_v10 }
 0x338   : > { %v690_v56 = vpop.f32.mrf.mxu2 }
 0x339   : > { %v693_v57 = vmul.f32 0.35355338, %v690_v56 }
 0x33b   : > { %v694_v58 = vsel %vm385_vm1, -1e+30, %v693_v57 }
 0x33c   : > { %v695_v59 = vsel %vm392_vm0, %v694_v58, -inf }
 0x33d   : > { %696 = vmax.xlane.f32.xlu2 %v695_v59 }
 0x342   : > { %v661_v11 = vpop.f32.mrf.mxu1 }
 0x343   : > { %v664_v13 = vadd.f32 %v661_v11, %v572_v12 }
 0x3b0   : > { %v697_v60 = vpop.xlane.xlu2 %696 }
 0x3b1   : > { %v698_v61 = vsub.f32 %v694_v58, %v697_v60 }
 0x3b3   : > { %v699_v62 = vmul.f32 1.442695, %v698_v61 }
 0x3b5   : > { %982 = vpow2.f32 %v699_v62 }
 0x3bb   : > { %v983_v63 = vpop.eup %982 }
 0x3bc   : > { %v701_v0 = vsel %vm392_vm0, %v983_v63, 0.0 }
 0x3bd   : > { %702 = vadd.xlane.f32.xlu2 %v701_v0 }
 0x430   : > { %v703_v3 = vpop.xlane.xlu2 %702 }
 0x431   : > { %984 = vrcp.f32 %v703_v3 }
 0x437   : > { %v985_v4 = vpop.eup %984 }
 0x438   : > { %v705_v5 = vmul.f32 %v985_v4, %v983_v63 }
 0x43a   : > { %910 = vmatmul.msk.f32.vlgmr.msra.gmra.mxu0 %vm392_vm0, %v705_v5 }
 0x4b7   : > { %v729_v6 = vpop.f32.mrf.mxu0 }
 0x4b8   : > { %911 = vmatmul.msk.f32.vlgmr.msra.gmra.mxu3 %vm392_vm0, %v729_v6 }
 0x53b   : > { %v753_v14 = vpop.f32.mrf.mxu3 }
 0x53c   : > { %v756_v15 = vadd.f32 %v753_v14, %v664_v13 }
 0x53e   : > { %758 = vst.msk [vmem:[%s380_s30] sm:$0xff] %vm757_vm2, %v756_v15 }
 0x53f PF: > { %p18_p1 = scmp.ge.s32.totalorder %s1168_s14, 4   ;;  %s1321_s24 = smov %s1076_s25 }
 0x540   : > { %s1322_s25 = smov %s1080_s26  ;;  %s1323_s26 = smov %s1178_s17 }
 0x541   : > { %s1324_s27 = smov %s1168_s14  ;;  %20 = sbr.rel (!%p18_p1) target bundleno = 4 (0x4), region = 104 }
 0x546   :  { %778 = vsyncpa [#allocation3], 1 }
 0x547   :  { %780 = vsyncpa [#allocation3 + $0x1], 1 }
 0x548   :  { %781 = vsyncpa [#allocation5], 1 }

// kernel: _lambda_.6
= control target key start
LH: loop header
LB: loop body
LE: loop exit
PB: predicated region body
PF: predicated region fallthrough
CT: control target
= control target key end

     0   :  { %16 = vsyncpa [#allocation4], 0  ;;  %s1091_s0 = inlined_call_operand.vmem [shape: f32[2], index: 0, kind: input, shape index: {}]   ;;  %s1092_s1 = inlined_call_operand.vmem [shape: f32[16,32], index: 1, kind: input, shape index: {}]   ;;  %s1093_s2 = inlined_call_operand.hbm [shape: f32[32,32], index: 2, kind: input, shape index: {}]   ;;  %s1094_s3 = inlined_call_operand.vmem [shape: f32[1,32], index: 3, kind: input, shape index: {}]   ;;  %s1095_s4 = inlined_call_operand.hbm [shape: f32[32,32], index: 4, kind: input, shape index: {}]   ;;  %s1096_s5 = inlined_call_operand.vmem [shape: f32[1,32], index: 5, kind: input, shape index: {}]   ;;  %s1097_s6 = inlined_call_operand.hbm [shape: f32[32,32], index: 6, kind: input, shape index: {}]   ;;  %s1098_s7 = inlined_call_operand.vmem [shape: f32[1,32], index: 7, kind: input, shape index: {}]   ;;  %s1099_s8 = inlined_call_operand.vmem [shape: f32[16,32], index: 8, kind: output, shape index: {0}]   ;;  %s1100_s9 = inlined_call_operand.vmem [shape: f32[16,32], index: 9, kind: output, shape index: {1}]   ;;  %s1101_s10 = inlined_call_operand.vmem [shape: f32[16,32], index: 10, kind: output, shape index: {2}]  }
   0x1   :  { %17 = vsyncpa [#allocation3], 0 }
   0x2   :  { %18 = vsyncpa [#allocation7], 0  ;;  %s994_s13 = smov 0  }
   0x3 LB: > { %s1000_s14 = sadd.s32 4294967295, %s930_s13   ;;  %p727_p0 = scmp.ge.s32.totalorder %s930_s13, 1  ;;  %s930_s13 = sphi %s994_s13, %s24_s13  }
   0x4   : > { %p280_p1 = scmp.lt.s32.totalorder %s930_s13, 3  ;;  %p777_p2 = scmp.eq.s32.totalorder %s1000_s14, 0 }
   0x5   : > { %s318_s17 = sshll.u32 %s1095_s4, 4  ;;  %s292_s21 = sshll.u32 %s1091_s0, 4  ;;  %s319_s17 = int_to_ptr.hbm [resolvable:$true] %s318_s17  ;;  %s293_s21 = int_to_ptr.vmem [resolvable:$true] %s292_s21 }
   0x6   : > { %p1008_p3 = pnand %p727_p0, %p280_p1  ;;  %s932_s22 = smov [#allocation6]  }
   0x7   : > { %s320_s23 = sshll.u32 %s932_s22, 4  ;;  %s301_s27 = sshll.u32 %s1093_s2, 4  ;;  %s321_s23 = int_to_ptr.vmem [resolvable:$true] %s320_s23  ;;  %s302_s27 = int_to_ptr.hbm [resolvable:$true] %s301_s27 }
   0x8   : > { %p764_p4 = pneg %p1008_p3  ;;  %s933_s28 = smov 128  }
   0x9   : > { %s934_s29 = smov 8   ;;  %s935_s30 = smov [#allocation2]  }
   0xa   : > { %p1019_p5 = pnand %p777_p2, %p764_p4  ;;  %s936_s11 = smov [#allocation5]  }
   0xb   : > { %s303_s12 = sshll.u32 %s936_s11, 4  ;;  %s335_s19 = sshll.u32 %s1097_s6, 4  ;;  %s304_s12 = int_to_ptr.vmem [resolvable:$true] %s303_s12  ;;  %s336_s19 = int_to_ptr.hbm [resolvable:$true] %s335_s19 }
   0xc   : > { %773 = dma.hbm_to_vmem [thread:$0]  (!%p1019_p5), %s319_s17, 512, %s321_s23, [#allocation7], %s933_s28, %s933_s28, %s934_s29  }
   0xd   : > { %767 = dma.vmem_to_smem (!%p1019_p5), %s293_s21, 16, %s935_s30, [#allocation4]  }
   0xe   : > { %770 = dma.hbm_to_vmem [thread:$0]  (!%p1019_p5), %s302_s27, 512, %s304_s12, [#allocation3], %s933_s28, %s933_s28, %s934_s29  }
   0xf   : > { %s937_s20 = smov [#allocation8]   ;;  %363 = sbr.rel (%p1008_p3) target bundleno = 437 (0x1b5), region = 52 }
  0x10   : > { %s337_s22 = sshll.u32 %s937_s20, 4  ;;  %s338_s22 = int_to_ptr.vmem [resolvable:$true] %s337_s22 }
  0x11   : > { %776 = dma.hbm_to_vmem [thread:$0]  (!%p1019_p5), %s336_s19, 512, %s338_s22, [#allocation7], %s933_s28, %s933_s28, %s934_s29  }
  0x14   : > { %917 = dma.done.wait (%p777_p2), [#allocation4], 16  }
  0x15   : > { %919 = vsyncadd (%p777_p2), [#allocation4], 4294967280 }
  0x16   : > { %921 = dma.done.wait (%p777_p2), [#allocation3], 512  }
  0x17   : > { %923 = vsyncadd (%p777_p2), [#allocation3], 4294966784 }
  0x18   : > { %925 = dma.done.wait (%p777_p2), [#allocation7], 1024  }
  0x19   : > { %927 = vsyncadd (%p777_p2), [#allocation7], 4294966272 }
  0x1a   : > { %385 = sfence }
  0x1b   : > { %p424_p6 = scmp.lt.s32.totalorder %s1000_s14, 1  ;;  %vm443_vm0 = vcmask 261120   ;;  %v938_v2 = vmov 32.0   ;;  %v480_v14 = vld [vmem:[#allocation5 + $0x18] sm:$0xff]  ;;  %v479_v17 = vld [vmem:[#allocation5 + $0x10] sm:$0xff]  ;;  %v478_v20 = vld [vmem:[#allocation5 + $0x8] sm:$0xff] }
  0x1c   : > { %803 = vrcp.f32 %v938_v2  ;;  %v512_v15 = vld [vmem:[#allocation6 + $0x18] sm:$0xff]  ;;  %500 = vmatpush.msra.mxu0 %v480_v14  ;;  %v511_v18 = vld [vmem:[#allocation6 + $0x10] sm:$0xff]  ;;  %v510_v21 = vld [vmem:[#allocation6 + $0x8] sm:$0xff]  ;;  %s742_s24 = sld [smem:[#allocation2 + $0x1]] }
  0x1d   : > { %s1105_s14 = smov (!%p424_p6, %s1000_s14), 1  ;;  %v541_v16 = vld [vmem:[#allocation8 + $0x18] sm:$0xff]  ;;  %529 = vmatpush.msra.mxu1 %v512_v15  ;;  %v540_v19 = vld [vmem:[#allocation8 + $0x10] sm:$0xff]  ;;  %v539_v22 = vld [vmem:[#allocation8 + $0x8] sm:$0xff] }
  0x1e   : > { %s1053_s17 = sshll.u32 %s1105_s14, 3  ;;  %558 = vmatpush.msra.mxu2 %v541_v16  ;;  %501 = vmatpush.msra.mxu0 %v479_v17  ;;  %v477_v23 = vld [vmem:[#allocation5] sm:$0xff]  ;;  %s440_s14 = sld [smem:[#allocation2]] }
  0x1f   : > { %s427_s23 = scalar_lea.vmem %s1092_s1, %s1053_s17  ;;  %530 = vmatpush.msra.mxu1 %v511_v18  ;;  %v509_v24 = vld [vmem:[#allocation6] sm:$0xff]  ;;  %s431_s11 = scalar_lea.vmem %s1099_s8, %s1053_s17 }
  0x20   : > { %v442_v0 = vld [vmem:[%s427_s23] sm:$0xff]  ;;  %559 = vmatpush.msra.mxu2 %v540_v19  ;;  %502 = vmatpush.msra.mxu0 %v478_v20  ;;  %s435_s16 = scalar_lea.vmem %s1100_s9, %s1053_s17  ;;  %s439_s21 = scalar_lea.vmem %s1101_s10, %s1053_s17 }
  0x21   : > { %v444_v1 = vsel %vm443_vm0, %v442_v0, 0.0  ;;  %531 = vmatpush.msra.mxu1 %v510_v21  ;;  %v538_v25 = vld [vmem:[#allocation8] sm:$0xff] }
  0x22   : > { %445 = vadd.xlane.f32.xlu0 %v444_v1  ;;  %v804_v3 = vpop.eup %803  ;;  %560 = vmatpush.msra.mxu2 %v539_v22  ;;  %v475_v38 = vstv %s742_s24  ;;  %v800_v41 = vld [vmem:[%s1094_s3] ss:$0 sm:$0xff] }
  0x23   : > { %v448_v4 = vmul.f32 32.0, %v804_v3  ;;  %vm452_vm1 = vweird.f32 %v804_v3  ;;  %503 = vmatpush.msra.mxu0 %v477_v23  ;;  %532 = vmatpush.msra.mxu1 %v509_v24  ;;  %v801_v42 = vld [vmem:[%s1096_s5] ss:$0 sm:$0xff] }
  0x24   : > { %561 = vmatpush.msra.mxu2 %v538_v25  ;;  %v473_v36 = vstv %s440_s14  ;;  %v802_v47 = vld [vmem:[%s1098_s7] ss:$0 sm:$0xff] }
  0x25   : > { %v449_v5 = vsub.f32 1.0, %v448_v4 }
  0x27   : > { %v450_v6 = vmul.f32 %v804_v3, %v449_v5 }
  0x29   : > { %v451_v7 = vadd.f32 %v804_v3, %v450_v6 }
  0x2b   : > { %v453_v8 = vsel %vm452_vm1, %v804_v3, %v451_v7 }
  0x95   : > { %v446_v9 = vpop.xlane.xlu0 %445 }
  0x96   : > { %v454_v10 = vmul.f32 %v453_v8, %v446_v9 }
  0x98   : > { %v455_v11 = vsub.f32 %v442_v0, %v454_v10 }
  0x9a   : > { %v456_v12 = vmul.f32 %v455_v11, %v455_v11 }
  0x9c   : > { %v457_v13 = vsel %vm443_vm0, %v456_v12, 0.0 }
  0x9d   : > { %458 = vadd.xlane.f32.xlu0 %v457_v13 }
 0x110   : > { %v459_v26 = vpop.xlane.xlu0 %458 }
 0x111   : > { %v460_v27 = vmul.f32 0.032258064, %v459_v26 }
 0x113   : > { %v461_v28 = vadd.f32 1e-06, %v460_v27 }
 0x115   : > { %805 = vrsqrt.f32 %v461_v28  ;;  %vm468_vm3 = vweird.f32 %v461_v28 }
 0x11b   : > { %v806_v29 = vpop.eup %805 }
 0x11c   : > { %v463_v30 = vmul.f32 %v806_v29, %v461_v28  ;;  %vm469_vm2 = vweird.f32 %v806_v29 }
 0x11d   : > { %vm470_vm4 = vmor %vm468_vm3, %vm469_vm2 }
 0x11e   : > { %v464_v31 = vmul.f32 %v806_v29, %v463_v30 }
 0x120   : > { %v465_v32 = vmul.f32 0.5, %v464_v31 }
 0x122   : > { %v466_v33 = vsub.f32 1.5, %v465_v32 }
 0x124   : > { %v467_v34 = vmul.f32 %v806_v29, %v466_v33 }
 0x126   : > { %v471_v35 = vsel %vm470_vm4, %v806_v29, %v467_v34 }
 0x127   : > { %v472_v37 = vmul.f32 %v471_v35, %v455_v11 }
 0x129   : > { %v474_v39 = vmul.f32 %v473_v36, %v472_v37 }
 0x12b   : > { %v476_v40 = vadd.f32 %v475_v38, %v474_v39 }
 0x12d   : > { %743 = vmatmul.msk.f32.vlgmr.msra.gmra.mxu0 %vm443_vm0, %v476_v40  ;;  %744 = vmatmul.msk.f32.vlgmr.msra.gmra.mxu1 %vm443_vm0, %v476_v40 }
 0x12e   : > { %745 = vmatmul.msk.f32.vlgmr.msra.gmra.mxu2 %vm443_vm0, %v476_v40 }
 0x1aa   : > { %v505_v43 = vpop.f32.mrf.mxu0  ;;  %v534_v44 = vpop.f32.mrf.mxu1 }
 0x1ab   : > { %v506_v45 = vadd.f32 %v800_v41, %v505_v43  ;;  %v535_v46 = vadd.f32 %v801_v42, %v534_v44 }
 0x1ad   : > { %508 = vst.msk [vmem:[%s431_s11] sm:$0xff] %vm443_vm0, %v506_v45 }
 0x1ae   : > { %537 = vst.msk [vmem:[%s435_s16] sm:$0xff] %vm443_vm0, %v535_v46 }
 0x1b1   : > { %v563_v48 = vpop.f32.mrf.mxu2 }
 0x1b2   : > { %v564_v49 = vadd.f32 %v802_v47, %v563_v48 }
 0x1b4   : > { %566 = vst.msk [vmem:[%s439_s21] sm:$0xff] %vm443_vm0, %v564_v49 }
 0x1b5 PF: > { %s24_s13 = sadd.s32 1, %s930_s13  }
 0x1b6   : > { %p21_p7 = scmp.ge.s32.totalorder %s24_s13, 4  }
 0x1b8   :  { %23 = sbr.rel (!%p21_p7) target bundleno = 3 (0x3), region = 124 }
 0x1bd   :  { %614 = vsyncpa [#allocation3], 1 }
 0x1be   :  { %616 = vsyncpa [#allocation3 + $0x1], 1 }
 0x1bf   :  { %617 = vsyncpa [#allocation7], 1 }
 0x1c0   :  { %618 = vsyncpa [#allocation4], 1 }
 0x1c1   :  { %620 = vsyncpa [#allocation4 + $0x1], 1 }

// kernel: _lambda_.9
= control target key start
LH: loop header
LB: loop body
LE: loop exit
PB: predicated region body
PF: predicated region fallthrough
CT: control target
= control target key end

     0   :  { %12 = vsyncpa [#allocation3], 0  ;;  %s949_s0 = inlined_call_operand.hbm [shape: f32[16,32], index: 0, kind: input, shape index: {}]   ;;  %s950_s1 = inlined_call_operand.hbm [shape: f32[32,32], index: 1, kind: input, shape index: {}]   ;;  %s951_s2 = inlined_call_operand.vmem [shape: f32[1,32], index: 2, kind: input, shape index: {}]   ;;  %s952_s3 = inlined_call_operand.hbm [shape: f32[32,32], index: 3, kind: input, shape index: {}]   ;;  %s953_s4 = inlined_call_operand.hbm [shape: f32[1,32], index: 4, kind: input, shape index: {}]   ;;  %s954_s5 = inlined_call_operand.vmem [shape: f32[16,32], index: 5, kind: output, shape index: {0}]   ;;  %s955_s6 = inlined_call_operand.vmem [shape: f32[16,32], index: 6, kind: output, shape index: {1}]  }
   0x1   :  { %14 = vsyncpa [#allocation3 + $0x1], 0 }
   0x2   :  { %15 = vsyncpa [#allocation5], 0 }
   0x3   :  { %16 = vsyncpa [#allocation8], 0  ;;  %s813_s21 = smov 0   ;;  %s815_s22 = smov 0  }
   0x4   :  { %s817_s23 = smov 0   ;;  %s819_s24 = smov 0  }
   0x5 LB: > { %s200_s27 = sshll.u32 %s950_s1, 4  ;;  %s837_s28 = sadd.s32 4294967295, %s771_s24   ;;  %s771_s24 = sphi %s819_s24, %s963_s24   ;;  %s767_s23 = sphi %s817_s23, %s962_s23   ;;  %s763_s22 = sphi %s815_s22, %s961_s22   ;;  %s759_s21 = sphi %s813_s21, %s960_s21   ;;  %s201_s27 = int_to_ptr.hbm [resolvable:$true] %s200_s27 }
   0x6   : > { %p517_p0 = scmp.ge.s32.totalorder %s771_s24, 1  ;;  %p43_p1 = scmp.eq.s32.totalorder %s837_s28, 0 }
   0x7   : > { %p189_p2 = scmp.lt.s32.totalorder %s771_s24, 3  ;;  %s773_s30 = smov [#allocation4]  }
   0x8   : > { %s202_s7 = sshll.u32 %s773_s30, 4  ;;  %s217_s10 = sshll.u32 %s952_s3, 4  ;;  %s203_s7 = int_to_ptr.vmem [resolvable:$true] %s202_s7  ;;  %s218_s10 = int_to_ptr.hbm [resolvable:$true] %s217_s10 }
   0x9   : > { %p842_p3 = pnand %p517_p0, %p189_p2  ;;  %s232_s14 = sshll.u32 %s953_s4, 4  ;;  %s233_s14 = int_to_ptr.hbm [resolvable:$true] %s232_s14 }
   0xa   : > { %s774_s15 = smov [#allocation6]   ;;  %s775_s17 = smov 128  }
   0xb   : > { %p549_p4 = pneg %p842_p3  ;;  %s219_s16 = sshll.u32 %s774_s15, 4  ;;  %s220_s16 = int_to_ptr.vmem [resolvable:$true] %s219_s16 }
   0xc   : > { %s776_s18 = smov 8   ;;  %s777_s19 = smov [#allocation7]  }
   0xd   : > { %p853_p5 = pnand %p549_p4, %p43_p1  ;;  %s234_s20 = sshll.u32 %s777_s19, 4  ;;  %s235_s20 = int_to_ptr.vmem [resolvable:$true] %s234_s20 }
   0xe   : > { %s867_s25 = sadd.s32 1, %s771_s24   ;;  %s29_s30 = sadd.s32 1, %s767_s23 }
   0xf   : > { %552 = dma.hbm_to_vmem [thread:$0]  (!%p853_p5), %s201_s27, 512, %s203_s7, [#allocation5], %s775_s17, %s775_s17, %s776_s18  }
  0x10   : > { %555 = dma.hbm_to_vmem [thread:$0]  (!%p853_p5), %s218_s10, 512, %s220_s16, [#allocation5], %s775_s17, %s775_s17, %s776_s18  }
  0x11   : > { %558 = dma.hbm_to_vmem [thread:$0]  (!%p853_p5), %s233_s14, 16, %s235_s20, [#allocation8]  }
  0x12   : > { %s26_s26 = ssub.s32 %s771_s24, %s867_s25  ;;  %p36_p7 = scmp.ne.s32.totalorder %s767_s23, %s763_s22 }
  0x13   : > { %p27_p6 = scmp.eq.s32.totalorder %s26_s26, 0  ;;  %p37_p8 = scmp.eq.s32.totalorder %s771_s24, 0 }
  0x14   : > { %p42_p9 = scmp.ne.s32.totalorder %s763_s22, %s759_s21  ;;  %p566_p12 = scmp.lt.s32.totalorder %s771_s24, 2 }
  0x15   : > { %s878_s27 = scalar_select %p27_p6, %s767_s23, %s29_s30  }
  0x16   : > { %p38_p10 = por %p37_p8, %p36_p7  ;;  %p882_p11 = por %p43_p1, %p42_p9 }
  0x17   : > { %s245_s8 = sand.u32 1, %s767_s23   ;;  %s523_s10 = sshll.u32 %s771_s24, 3 }
  0x18   : > { %s522_s9 = sshll.u32 %s245_s8, 3  ;;  %s253_s13 = scalar_lea.hbm %s949_s0, %s523_s10 }
  0x19   : > { %s249_s14 = scalar_lea.vmem [#allocation2], %s522_s9  ;;  %s255_s16 = sshll.u32 %s253_s13, 4  ;;  %s256_s16 = int_to_ptr.hbm [resolvable:$true] %s255_s16 }
  0x1a   : > { %s257_s15 = sshll.u32 %s249_s14, 4  ;;  %p892_p13 = pnand %p566_p12, %p38_p10  ;;  %s258_s15 = int_to_ptr.vmem [resolvable:$true] %s257_s15 }
  0x1b   : > { %s246_s17 = scalar_lea.sflag [#allocation3], %s245_s8  ;;  %s699_s18 = sshra.s32 %s256_s16, 4  ;;  %s700_s18 = int_to_ptr.hbm [resolvable:$true] %s699_s18 }
  0x1c   : > { %s701_s19 = scalar_lea.hbm %s700_s18, 8  ;;  %p703_p2 = pneg %p892_p13 }
  0x1d   : > { %p702_p0 = scmp.ne.s32.totalorder %s700_s18, %s701_s19  ;;  %s706_s26 = scalar_lea.hbm %s949_s0, 16 }
  0x1e   : > { %p707_p6 = scmp.lt.s32.totalorder %s700_s18, %s949_s0  ;;  %p708_p7 = scmp.lt.s32.totalorder %s706_s26, %s701_s19 }
  0x1f   : > { %p704_p4 = pnand %p703_p2, %p702_p0 }
  0x20   : > { %p709_p8 = por %p708_p7, %p707_p6 }
  0x21   : > { %p705_p5 = pneg %p704_p4 }
  0x23   : > { %p710_p9 = pnand %p709_p8, %p705_p5 }
  0x25   : > { %713 = shalt.err (!%p710_p9)
}
  0x26   : > { %562 = dma.hbm_to_vmem [thread:$0]  (!%p892_p13), %s256_s16, 128, %s258_s15, %s246_s17  }
  0x27   : > { %266 = sbr.rel (%p842_p3) target bundleno = 187 (0xbb), region = 40  ;;  %s268_s8 = sand.u32 (!%p842_p3), 1, %s763_s22  }
  0x28   : > { %s525_s10 = sshll.u32 (!%p842_p3), %s268_s8, 3  ;;  %s269_s11 = scalar_lea.sflag (!%p842_p3), [#allocation3], %s268_s8 }
  0x29   : > { %s272_s12 = scalar_lea.vmem (!%p842_p3), [#allocation2], %s525_s10 }
  0x2c   : > { %746 = dma.done.wait (%p882_p11), %s269_s11, 128  }
  0x2d   : > { %748 = vsyncadd (%p882_p11), %s269_s11, 4294967168 }
  0x2e   : > { %750 = dma.done.wait (%p43_p1), [#allocation5], 1024  }
  0x2f   : > { %752 = vsyncadd (%p43_p1), [#allocation5], 4294966272 }
  0x30   : > { %754 = dma.done.wait (%p43_p1), [#allocation8], 16  }
  0x31   : > { %756 = vsyncadd (%p43_p1), [#allocation8], 4294967280  ;;  %v332_v0 = vld [vmem:[#allocation4 + $0x18] sm:$0xff]  ;;  %v331_v2 = vld [vmem:[#allocation4 + $0x10] sm:$0xff]  ;;  %vm337_vm0 = vcmask 261120   ;;  %p320_p1 = scmp.lt.s32.totalorder %s837_s28, 1 }
  0x32   : > { %v365_v1 = vld [vmem:[#allocation6 + $0x18] sm:$0xff]  ;;  %353 = vmatpush.msra.mxu0 %v332_v0  ;;  %v364_v3 = vld [vmem:[#allocation6 + $0x10] sm:$0xff]  ;;  %v330_v4 = vld [vmem:[#allocation4 + $0x8] sm:$0xff] }
  0x33   : > { %382 = vmatpush.msra.mxu1 %v365_v1  ;;  %v363_v5 = vld [vmem:[#allocation6 + $0x8] sm:$0xff]  ;;  %v329_v6 = vld [vmem:[#allocation4] sm:$0xff]  ;;  %v328_v8 = vld [vmem:[%s272_s12] sm:$0xff]  ;;  %s965_s28 = smov (!%p320_p1, %s837_s28), 1 }
  0x34   : > { %354 = vmatpush.msra.mxu0 %v331_v2  ;;  %v362_v7 = vld [vmem:[#allocation6] sm:$0xff]  ;;  %s529_s29 = sshll.u32 %s965_s28, 3  ;;  %v607_v9 = vld [vmem:[%s951_s2] ss:$0 sm:$0xff] }
  0x35   : > { %383 = vmatpush.msra.mxu1 %v364_v3  ;;  %v608_v10 = vld [vmem:[#allocation7] ss:$0 sm:$0xff]  ;;  %s323_s16 = scalar_lea.vmem %s954_s5, %s529_s29  ;;  %s327_s18 = scalar_lea.vmem %s955_s6, %s529_s29 }
  0x36   : > { %355 = vmatpush.msra.mxu0 %v330_v4 }
  0x37   : > { %384 = vmatpush.msra.mxu1 %v363_v5 }
  0x38   : > { %356 = vmatpush.msra.mxu0 %v329_v6 }
  0x39   : > { %385 = vmatpush.msra.mxu1 %v362_v7  ;;  %531 = vmatmul.msk.f32.vlgmr.msra.gmra.mxu0 %vm337_vm0, %v328_v8 }
  0x3a   : > { %532 = vmatmul.msk.f32.vlgmr.msra.gmra.mxu1 %vm337_vm0, %v328_v8 }
  0xb6   : > { %v358_v11 = vpop.f32.mrf.mxu0 }
  0xb7   : > { %v387_v12 = vpop.f32.mrf.mxu1  ;;  %v359_v13 = vadd.f32 %v607_v9, %v358_v11 }
  0xb8   : > { %v388_v14 = vadd.f32 %v608_v10, %v387_v12 }
  0xb9   : > { %361 = vst.msk [vmem:[%s323_s16] sm:$0xff] %vm337_vm0, %v359_v13 }
  0xba   : > { %390 = vst.msk [vmem:[%s327_s18] sm:$0xff] %vm337_vm0, %v388_v14 }
  0xbb PF: > { %p19_p3 = scmp.ge.s32.totalorder %s867_s25, 4   ;;  %s960_s21 = smov %s763_s22 }
  0xbc   : > { %s961_s22 = smov %s767_s23  ;;  %s962_s23 = smov %s878_s27 }
  0xbd   : > { %s963_s24 = smov %s867_s25  ;;  %21 = sbr.rel (!%p19_p3) target bundleno = 5 (0x5), region = 104 }
  0xc2   :  { %424 = vsyncpa [#allocation3], 1 }
  0xc3   :  { %426 = vsyncpa [#allocation3 + $0x1], 1 }
  0xc4   :  { %427 = vsyncpa [#allocation5], 1 }
  0xc5   :  { %428 = vsyncpa [#allocation8], 1 }

// kernel: _lambda_.8
= control target key start
LH: loop header
LB: loop body
LE: loop exit
PB: predicated region body
PF: predicated region fallthrough
CT: control target
= control target key end

     0   :  { %9 = vsyncpa [#allocation4], 0  ;;  %s563_s0 = inlined_call_operand.vmem [shape: f32[2], index: 0, kind: input, shape index: {}]   ;;  %s564_s1 = inlined_call_operand.vmem [shape: f32[16,32], index: 1, kind: input, shape index: {}]   ;;  %s565_s2 = inlined_call_operand.hbm [shape: f32[32,32], index: 2, kind: input, shape index: {}]   ;;  %s566_s3 = inlined_call_operand.vmem [shape: f32[1,32], index: 3, kind: input, shape index: {}]   ;;  %s567_s4 = inlined_call_operand.vmem [shape: f32[16,32], index: 4, kind: output, shape index: {}]  }
   0x1   :  { %10 = vsyncpa [#allocation3], 0  ;;  %s513_s15 = smov 0  }
   0x2 LB: > { %s148_s18 = sshll.u32 %s563_s0, 4  ;;  %s370_s19 = sadd.s32 4294967295, %s481_s15   ;;  %s481_s15 = sphi %s513_s15, %s16_s15   ;;  %s149_s18 = int_to_ptr.vmem [resolvable:$true] %s148_s18 }
   0x3   : > { %p372_p0 = scmp.ge.s32.totalorder %s481_s15, 1  ;;  %p136_p1 = scmp.lt.s32.totalorder %s481_s15, 3 }
   0x4   : > { %p400_p2 = scmp.eq.s32.totalorder %s370_s19, 0  ;;  %s157_s23 = sshll.u32 %s565_s2, 4  ;;  %s158_s23 = int_to_ptr.hbm [resolvable:$true] %s157_s23 }
   0x5   : > { %p524_p3 = pnand %p372_p0, %p136_p1  ;;  %s483_s24 = smov [#allocation5]  }
   0x6   : > { %s159_s25 = sshll.u32 %s483_s24, 4  ;;  %s484_s26 = smov [#allocation2]   ;;  %s160_s25 = int_to_ptr.vmem [resolvable:$true] %s159_s25 }
   0x7   : > { %p393_p4 = pneg %p524_p3  ;;  %s485_s27 = smov 128  }
   0x8   : > { %s486_s28 = smov 8   ;;  %185 = sbr.rel (%p524_p3) target bundleno = 421 (0x1a5), region = 36 }
   0x9   : > { %p394_p5 = pnand %p400_p2, %p393_p4 }
   0xb   : > { %396 = dma.vmem_to_smem (!%p394_p5), %s149_s18, 16, %s484_s26, [#allocation4]  }
   0xc   : > { %399 = dma.hbm_to_vmem [thread:$0]  (!%p394_p5), %s158_s23, 512, %s160_s25, [#allocation3], %s485_s27, %s485_s27, %s486_s28  }
   0xd   : > { %472 = dma.done.wait (%p400_p2), [#allocation4], 16  }
   0xe   : > { %474 = vsyncadd (%p400_p2), [#allocation4], 4294967280 }
   0xf   : > { %476 = dma.done.wait (%p400_p2), [#allocation3], 512  }
  0x10   : > { %478 = vsyncadd (%p400_p2), [#allocation3], 4294966784 }
  0x11   : > { %197 = sfence }
  0x12   : > { %p216_p6 = scmp.lt.s32.totalorder %s370_s19, 1  ;;  %vm227_vm0 = vcmask 261120   ;;  %v487_v2 = vmov 32.0   ;;  %v264_v14 = vld [vmem:[#allocation5 + $0x18] sm:$0xff]  ;;  %v263_v15 = vld [vmem:[#allocation5 + $0x10] sm:$0xff]  ;;  %v262_v16 = vld [vmem:[#allocation5 + $0x8] sm:$0xff] }
  0x13   : > { %418 = vrcp.f32 %v487_v2  ;;  %284 = vmatpush.msra.mxu0 %v264_v14  ;;  %v261_v17 = vld [vmem:[#allocation5] sm:$0xff]  ;;  %s224_s7 = sld [smem:[#allocation2]] }
  0x14   : > { %s570_s19 = smov (!%p216_p6, %s370_s19), 1  ;;  %s381_s8 = sld [smem:[#allocation2 + $0x1]]  ;;  %v417_v33 = vld [vmem:[%s566_s3] ss:$0 sm:$0xff] }
  0x15   : > { %s379_s29 = sshll.u32 %s570_s19, 3  ;;  %285 = vmatpush.msra.mxu0 %v263_v15 }
  0x16   : > { %s219_s6 = scalar_lea.vmem %s564_s1, %s379_s29  ;;  %s223_s13 = scalar_lea.vmem %s567_s4, %s379_s29 }
  0x17   : > { %v226_v0 = vld [vmem:[%s219_s6] sm:$0xff]  ;;  %286 = vmatpush.msra.mxu0 %v262_v16 }
  0x18   : > { %v228_v1 = vsel %vm227_vm0, %v226_v0, 0.0 }
  0x19   : > { %229 = vadd.xlane.f32.xlu0 %v228_v1  ;;  %v419_v3 = vpop.eup %418  ;;  %287 = vmatpush.msra.mxu0 %v261_v17  ;;  %v257_v28 = vstv %s224_s7 }
  0x1a   : > { %v232_v4 = vmul.f32 32.0, %v419_v3  ;;  %vm236_vm1 = vweird.f32 %v419_v3  ;;  %v259_v30 = vstv %s381_s8 }
  0x1c   : > { %v233_v5 = vsub.f32 1.0, %v232_v4 }
  0x1e   : > { %v234_v6 = vmul.f32 %v419_v3, %v233_v5 }
  0x20   : > { %v235_v7 = vadd.f32 %v419_v3, %v234_v6 }
  0x22   : > { %v237_v8 = vsel %vm236_vm1, %v419_v3, %v235_v7 }
  0x8c   : > { %v230_v9 = vpop.xlane.xlu0 %229 }
  0x8d   : > { %v238_v10 = vmul.f32 %v237_v8, %v230_v9 }
  0x8f   : > { %v239_v11 = vsub.f32 %v226_v0, %v238_v10 }
  0x91   : > { %v240_v12 = vmul.f32 %v239_v11, %v239_v11 }
  0x93   : > { %v241_v13 = vsel %vm227_vm0, %v240_v12, 0.0 }
  0x94   : > { %242 = vadd.xlane.f32.xlu0 %v241_v13 }
 0x107   : > { %v243_v18 = vpop.xlane.xlu0 %242 }
 0x108   : > { %v244_v19 = vmul.f32 0.032258064, %v243_v18 }
 0x10a   : > { %v245_v20 = vadd.f32 1e-06, %v244_v19 }
 0x10c   : > { %420 = vrsqrt.f32 %v245_v20  ;;  %vm252_vm3 = vweird.f32 %v245_v20 }
 0x112   : > { %v421_v21 = vpop.eup %420 }
 0x113   : > { %v247_v22 = vmul.f32 %v421_v21, %v245_v20  ;;  %vm253_vm2 = vweird.f32 %v421_v21 }
 0x114   : > { %vm254_vm4 = vmor %vm252_vm3, %vm253_vm2 }
 0x115   : > { %v248_v23 = vmul.f32 %v421_v21, %v247_v22 }
 0x117   : > { %v249_v24 = vmul.f32 0.5, %v248_v23 }
 0x119   : > { %v250_v25 = vsub.f32 1.5, %v249_v24 }
 0x11b   : > { %v251_v26 = vmul.f32 %v421_v21, %v250_v25 }
 0x11d   : > { %v255_v27 = vsel %vm254_vm4, %v421_v21, %v251_v26 }
 0x11e   : > { %v256_v29 = vmul.f32 %v255_v27, %v239_v11 }
 0x120   : > { %v258_v31 = vmul.f32 %v257_v28, %v256_v29 }
 0x122   : > { %v260_v32 = vadd.f32 %v259_v30, %v258_v31 }
 0x124   : > { %382 = vmatmul.msk.f32.vlgmr.msra.gmra.mxu0 %vm227_vm0, %v260_v32 }
 0x1a1   : > { %v289_v34 = vpop.f32.mrf.mxu0 }
 0x1a2   : > { %v290_v35 = vadd.f32 %v417_v33, %v289_v34 }
 0x1a4   : > { %292 = vst.msk [vmem:[%s223_s13] sm:$0xff] %vm227_vm0, %v290_v35 }
 0x1a5 PF: > { %s16_s15 = sadd.s32 1, %s481_s15  }
 0x1a6   : > { %p13_p7 = scmp.ge.s32.totalorder %s16_s15, 4  }
 0x1a8   :  { %15 = sbr.rel (!%p13_p7) target bundleno = 2 (0x2), region = 76 }
 0x1ad   :  { %312 = vsyncpa [#allocation3], 1 }
 0x1ae   :  { %314 = vsyncpa [#allocation3 + $0x1], 1 }
 0x1af   :  { %315 = vsyncpa [#allocation4], 1 }
 0x1b0   :  { %317 = vsyncpa [#allocation4 + $0x1], 1 }

// kernel: _lambda_.11
= control target key start
LH: loop header
LB: loop body
LE: loop exit
PB: predicated region body
PF: predicated region fallthrough
CT: control target
= control target key end

     0   :  { %11 = vsyncpa [#allocation4], 0  ;;  %s787_s0 = inlined_call_operand.vmem [shape: f32[2], index: 0, kind: input, shape index: {}]   ;;  %s788_s1 = inlined_call_operand.vmem [shape: f32[16,32], index: 1, kind: input, shape index: {}]   ;;  %s789_s2 = inlined_call_operand.vmem [shape: f32[32,64], index: 2, kind: input, shape index: {}]   ;;  %s790_s3 = inlined_call_operand.vmem [shape: f32[1,64], index: 3, kind: input, shape index: {}]   ;;  %s791_s4 = inlined_call_operand.vmem [shape: f32[64,32], index: 4, kind: input, shape index: {}]   ;;  %s792_s5 = inlined_call_operand.vmem [shape: f32[1,32], index: 5, kind: input, shape index: {}]   ;;  %s793_s6 = inlined_call_operand.hbm [shape: f32[16,32], index: 6, kind: output, shape index: {}]  }
   0x1   :  { %12 = vsyncpa [#allocation3], 0 }
   0x2   :  { %14 = vsyncpa [#allocation3 + $0x1], 0  ;;  %s647_s21 = smov 0   ;;  %s649_s22 = smov 0  }
   0x3   :  { %s651_s23 = smov 0   ;;  %s653_s24 = smov 0  }
   0x4 LB: > { %s668_s25 = sadd.s32 4294967295, %s608_s24   ;;  %s455_s26 = sadd.s32 4294967294, %s608_s24   ;;  %s608_s24 = sphi %s653_s24, %s799_s24   ;;  %s604_s23 = sphi %s651_s23, %s798_s23   ;;  %s600_s22 = sphi %s649_s22, %s797_s22   ;;  %s596_s21 = sphi %s647_s21, %s796_s21  }
   0x5   : > { %s672_s27 = sadd.s32 1, %s608_s24   ;;  %s158_s28 = sadd.s32 1, %s604_s23 }
   0x6   : > { %s155_s29 = ssub.s32 %s608_s24, %s672_s27  ;;  %p168_p0 = scmp.ne.s32.totalorder %s604_s23, %s600_s22 }
   0x7   : > { %p156_p1 = scmp.eq.s32.totalorder %s155_s29, 0  ;;  %p169_p2 = scmp.eq.s32.totalorder %s668_s25, 1 }
   0x8   : > { %p174_p3 = scmp.ne.s32.totalorder %s600_s22, %s596_s21  ;;  %p175_p4 = scmp.eq.s32.totalorder %s455_s26, 1 }
   0x9   : > { %s683_s30 = scalar_select %p156_p1, %s604_s23, %s158_s28  }
   0xa   : > { %p685_p5 = por %p169_p2, %p168_p0  ;;  %p689_p6 = por %p175_p4, %p174_p3 }
   0xb   : > { %p456_p7 = scmp.ge.s32.totalorder %s608_s24, 1  ;;  %p182_p8 = scmp.lt.s32.totalorder %s608_s24, 3 }
   0xc   : > { %p484_p9 = scmp.eq.s32.totalorder %s668_s25, 0  ;;  %s194_s11 = sshll.u32 %s787_s0, 4  ;;  %s195_s11 = int_to_ptr.vmem [resolvable:$true] %s194_s11 }
   0xd   : > { %p183_p10 = pnand %p456_p7, %p182_p8  ;;  %s610_s12 = smov [#allocation2]  }
   0xf   : > { %p476_p11 = pneg %p183_p10  ;;  %226 = sbr.rel (%p183_p10) target bundleno = 561 (0x231), region = 44 }
  0x11   : > { %p477_p12 = pnand %p484_p9, %p476_p11 }
  0x13   : > { %479 = dma.vmem_to_smem (!%p477_p12), %s195_s11, 16, %s610_s12, [#allocation4]  }
  0x14   : > { %587 = dma.done.wait (%p484_p9), [#allocation4], 16  }
  0x15   : > { %589 = vsyncadd (%p484_p9), [#allocation4], 4294967280 }
  0x16   : > { %233 = sfence }
  0x17   : > { %p257_p13 = scmp.lt.s32.totalorder %s668_s25, 1  ;;  %vm264_vm0 = vcmask 261120   ;;  %v611_v2 = vmov 32.0   ;;  %v301_v14 = vld [vmem:[%s789_s2 + $0x18] sm:$0xff]  ;;  %v300_v15 = vld [vmem:[%s789_s2 + $0x10] sm:$0xff]  ;;  %v299_v16 = vld [vmem:[%s789_s2 + $0x8] sm:$0xff] }
  0x18   : > { %523 = vrcp.f32 %v611_v2  ;;  %321 = vmatpush.msra.mxu0 %v301_v14  ;;  %v298_v17 = vld [vmem:[%s789_s2] sm:$0xff]  ;;  %v337_v18 = vld [vmem:[%s791_s4 + $0x38] sm:$0xff]  ;;  %v336_v19 = vld [vmem:[%s791_s4 + $0x30] sm:$0xff]  ;;  %s262_s26 = sld [smem:[#allocation2]]  ;;  %vm342_vm5 = vcmask 523264   ;;  %s254_s16 = sand.u32 1, %s600_s22  }
  0x19   : > { %s258_s13 = scalar_select %p257_p13, %s668_s25, 1  ;;  %354 = vmatpush.msra.mxu1 %v337_v18  ;;  %v335_v20 = vld [vmem:[%s791_s4 + $0x28] sm:$0xff]  ;;  %v334_v23 = vld [vmem:[%s791_s4 + $0x20] sm:$0xff]  ;;  %v333_v25 = vld [vmem:[%s791_s4 + $0x18] sm:$0xff] }
  0x1a   : > { %322 = vmatpush.msra.mxu0 %v300_v15  ;;  %s463_s28 = sld [smem:[#allocation2 + $0x1]]  ;;  %v332_v38 = vld [vmem:[%s791_s4 + $0x10] sm:$0xff]  ;;  %v331_v39 = vld [vmem:[%s791_s4 + $0x8] sm:$0xff]  ;;  %v330_v40 = vld [vmem:[%s791_s4] sm:$0xff]  ;;  %s467_s18 = sshll.u32 %s668_s25, 3 }
  0x1b   : > { %s462_s14 = sshll.u32 %s258_s13, 3  ;;  %355 = vmatpush.msra.mxu1 %v336_v19  ;;  %v521_v41 = vld [vmem:[%s790_s3] ss:$0 sm:$0xff]  ;;  %s379_s29 = scalar_lea.hbm %s793_s6, %s467_s18 }
  0x1c   : > { %s260_s17 = scalar_lea.vmem %s788_s1, %s462_s14  ;;  %323 = vmatpush.msra.mxu0 %v299_v16  ;;  %v522_v45 = vld [vmem:[%s792_s5] ss:$0 sm:$0xff]  ;;  %s383_s11 = sshll.u32 %s379_s29, 4  ;;  %s384_s11 = int_to_ptr.hbm [resolvable:$true] %s383_s11 }
  0x1d   : > { %v704_v0 = vld [vmem:[%s260_s17] sm:$0xff]  ;;  %356 = vmatpush.msra.mxu1 %v335_v20  ;;  %s461_s17 = sshll.u32 %s254_s16, 3  ;;  %s369_s25 = scalar_lea.sflag [#allocation3], %s254_s16 }
  0x1e   : > { %v265_v1 = vsel %vm264_vm0, %v704_v0, 0.0  ;;  %v524_v3 = vpop.eup %523  ;;  %324 = vmatpush.msra.mxu0 %v298_v17  ;;  %v294_v33 = vstv %s262_s26  ;;  %s256_s9 = scalar_lea.vmem [#allocation5], %s461_s17  ;;  %s556_s12 = sshra.s32 %s384_s11, 4  ;;  %s557_s12 = int_to_ptr.hbm [resolvable:$true] %s556_s12 }
  0x1f   : > { %266 = vadd.xlane.f32.xlu0 %v265_v1  ;;  %v269_v4 = vmul.f32 32.0, %v524_v3  ;;  %vm273_vm1 = vweird.f32 %v524_v3  ;;  %357 = vmatpush.msra.mxu1 %v334_v23  ;;  %s381_s10 = sshll.u32 %s256_s9, 4  ;;  %s558_s13 = scalar_lea.hbm %s557_s12, 8  ;;  %s382_s10 = int_to_ptr.vmem [resolvable:$true] %s381_s10 }
  0x20   : > { %v296_v35 = vstv %s463_s28  ;;  %p559_p0 = scmp.ne.s32.totalorder %s557_s12, %s558_s13  ;;  %s562_s17 = scalar_lea.hbm %s793_s6, 16 }
  0x21   : > { %v270_v5 = vsub.f32 1.0, %v269_v4  ;;  %358 = vmatpush.msra.mxu1 %v333_v25  ;;  %p563_p3 = scmp.lt.s32.totalorder %s557_s12, %s793_s6  ;;  %p564_p4 = scmp.lt.s32.totalorder %s562_s17, %s558_s13 }
  0x22   : > { %p560_p1 = pnand %p559_p0, %p685_p5 }
  0x23   : > { %v271_v6 = vmul.f32 %v524_v3, %v270_v5  ;;  %359 = vmatpush.msra.mxu1 %v332_v38  ;;  %p565_p7 = por %p564_p4, %p563_p3 }
  0x24   : > { %p561_p2 = pneg %p560_p1 }
  0x25   : > { %v272_v7 = vadd.f32 %v524_v3, %v271_v6  ;;  %360 = vmatpush.msra.mxu1 %v331_v39 }
  0x26   : > { %p566_p8 = pnand %p565_p7, %p561_p2 }
  0x27   : > { %v274_v8 = vsel %vm273_vm1, %v524_v3, %v272_v7  ;;  %361 = vmatpush.msra.mxu1 %v330_v40 }
  0x92   : > { %v267_v9 = vpop.xlane.xlu0 %266 }
  0x93   : > { %v275_v10 = vmul.f32 %v274_v8, %v267_v9 }
  0x95   : > { %v276_v11 = vsub.f32 %v704_v0, %v275_v10 }
  0x97   : > { %v277_v12 = vmul.f32 %v276_v11, %v276_v11 }
  0x99   : > { %v278_v13 = vsel %vm264_vm0, %v277_v12, 0.0 }
  0x9a   : > { %279 = vadd.xlane.f32.xlu0 %v278_v13 }
 0x10d   : > { %v280_v21 = vpop.xlane.xlu0 %279 }
 0x10e   : > { %v281_v22 = vmul.f32 0.032258064, %v280_v21 }
 0x110   : > { %v282_v24 = vadd.f32 1e-06, %v281_v22 }
 0x112   : > { %525 = vrsqrt.f32 %v282_v24  ;;  %vm289_vm3 = vweird.f32 %v282_v24 }
 0x118   : > { %v526_v26 = vpop.eup %525 }
 0x119   : > { %v284_v27 = vmul.f32 %v526_v26, %v282_v24  ;;  %vm290_vm2 = vweird.f32 %v526_v26 }
 0x11a   : > { %vm291_vm4 = vmor %vm289_vm3, %vm290_vm2 }
 0x11b   : > { %v285_v28 = vmul.f32 %v526_v26, %v284_v27 }
 0x11d   : > { %v286_v29 = vmul.f32 0.5, %v285_v28 }
 0x11f   : > { %v287_v30 = vsub.f32 1.5, %v286_v29 }
 0x121   : > { %v288_v31 = vmul.f32 %v526_v26, %v287_v30 }
 0x123   : > { %v292_v32 = vsel %vm291_vm4, %v526_v26, %v288_v31 }
 0x124   : > { %v293_v34 = vmul.f32 %v292_v32, %v276_v11 }
 0x126   : > { %v295_v36 = vmul.f32 %v294_v33, %v293_v34 }
 0x128   : > { %v297_v37 = vadd.f32 %v296_v35, %v295_v36 }
 0x12a   : > { %464 = vmatmul.msk.f32.vlgmr.msra.gmra.mxu0 %vm264_vm0, %v297_v37 }
 0x1a7   : > { %v326_v42 = vpop.f32.mrf.mxu0 }
 0x1a8   : > { %v327_v43 = vadd.f32 %v521_v41, %v326_v42 }
 0x1aa   : > { %v329_v44 = vmax.f32 %v327_v43, 0.0 }
 0x1ac   : > { %465 = vmatmul.msk.f32.vlgmr.msra.gmra.mxu1 %vm342_vm5, %v329_v44 }
 0x229   : > { %v363_v46 = vpop.f32.mrf.mxu1 }
 0x22a   : > { %v364_v47 = vadd.f32 %v522_v45, %v363_v46 }
 0x22c   : > { %v366_v48 = vadd.f32 %v364_v47, %v704_v0 }
 0x22e   : > { %367 = vst.msk [vmem:[%s256_s9] sm:$0xff] %vm264_vm0, %v366_v48 }
 0x22f   : > { %569 = shalt.err (!%p566_p8)
}
 0x230   : > { %474 = dma.vmem_to_hbm [thread:$0]  (%p685_p5), %s382_s10, 128, %s384_s11, %s369_s25  }
 0x231 PF: > { %p486_p9 = scmp.ge.s32.totalorder %s608_s24, 2  ;;  %s395_s16 = sand.u32 1, %s596_s21  }
 0x232   : > { %s396_s20 = scalar_lea.sflag [#allocation3], %s395_s16 }
 0x233   : > { %p481_p10 = pnand %p486_p9, %p689_p6 }
 0x235   : > { %p482_p11 = pneg %p481_p10 }
 0x237   : > { %591 = dma.done.wait (%p482_p11), %s396_s20, 128  }
 0x238   : > { %593 = vsyncadd (%p482_p11), %s396_s20, 4294967168  ;;  %p17_p12 = scmp.ge.s32.totalorder %s672_s27, 4   ;;  %s796_s21 = smov %s600_s22 }
 0x239   : > { %s797_s22 = smov %s604_s23  ;;  %s798_s23 = smov %s683_s30 }
 0x23a   : > { %s799_s24 = smov %s672_s27  ;;  %19 = sbr.rel (!%p17_p12) target bundleno = 4 (0x4), region = 84 }
 0x23f   :  { %402 = vsyncpa [#allocation3], 1 }
 0x240   :  { %404 = vsyncpa [#allocation3 + $0x1], 1 }
 0x241   :  { %405 = vsyncpa [#allocation4], 1 }
 0x242   :  { %407 = vsyncpa [#allocation4 + $0x1], 1 }

</bundles_post_ra>
